<compile_context>
chip_gen: v7x
topology: tpu7x:2x2x1
jax: 0.10.0
libtpu: 0.0.40
codegen_flags: <defaults>
</compile_context>

<pallas_src>
import jax
import jax.numpy as jnp
from jax import lax
from jax.experimental import pallas as pl
from jax.experimental.pallas import tpu as pltpu


# ---------------------------------------------------------------------------
# Fused kernel. grid = (N, n_layers):
#   layer 0      : ConvTranspose2d(2,2) on (x||skip) -> H-padded VMEM plane
#   every layer  : conv3x3 (3 bf16 band matmuls) + GroupNorm(8) + ReLU
#   last layer   : store to o_ref
# ---------------------------------------------------------------------------
def _fused_unet_up_kernel(x_ref, atc_ref, psel_ref, bt_ref,
                          wband_ref, bc_ref, gam_ref, bet_ref,
                          mg_ref, mgt_ref, o_ref, plane_ref):
    # x_ref     : (1, H, W*Cin)  bf16   lane-concatenated (x || skip), channels fast
    # atc_ref   : (2, W*Cin, L)  bf16   convT band matrices per sub-row parity kh
    # psel_ref  : (H2, 2H)       f32    0/1 even/odd row-interleave matrix
    # bt_ref    : (1, L)         f32    convT bias tiled to lanes
    # wband_ref : (1, 3, L, L)   bf16   this layer's conv band matrices (one per dh)
    # bc/gam/bet: (1, 1, L)      f32    this layer's conv bias / GN affine, lane-tiled
    # mg/mgt    : (L, G)/(G, L)  f32    0/1 lane <-> group membership
    # o_ref     : (1, H2, L)     f32    L = 2W*Cout (lane-dense, 128 here)
    # plane_ref : VMEM (H2+2, L) f32    persistent H-zero-padded activation plane
    f32 = jnp.float32
    bf16 = jnp.bfloat16
    H2 = o_ref.shape[1]
    L = o_ref.shape[2]
    G = mg_ref.shape[1]
    layer = pl.program_id(1)
    n_layers = pl.num_programs(1)
    eps = 1e-5
    n_per_group = (H2 * L) / G            # = H2 * W2 * group_size

    # ---- layer 0: ConvTranspose2d(kernel=2, stride=2) ----------------------
    @pl.when(layer == 0)
    def _():
        xc = x_ref[0]                                                      # (H, W*Cin) bf16
        out_even = jnp.dot(xc, atc_ref[0], preferred_element_type=f32)     # rows 2h
        out_odd = jnp.dot(xc, atc_ref[1], preferred_element_type=f32)      # rows 2h+1
        stacked = jnp.concatenate([out_even, out_odd], axis=0)             # (2H, L), aligned
        act0 = (jnp.dot(psel_ref[...], stacked, preferred_element_type=f32)
                + bt_ref[...])                                             # interleaved (H2, L)
        zero_row = jnp.zeros((1, L), f32)
        plane_ref[0:1, :] = zero_row              # only the 1-row h halos are zeroed;
        plane_ref[H2 + 1:H2 + 2, :] = zero_row    # the interior is overwritten each layer
        plane_ref[1:H2 + 1, :] = act0

    # ---- conv3x3: 3 bf16 band matmuls, one per row tap dh ------------------
    # (the dw taps and the zero padding in w live inside the band matrices)
    a0 = plane_ref[0:H2, :].astype(bf16)
    a1 = plane_ref[1:H2 + 1, :].astype(bf16)
    a2 = plane_ref[2:H2 + 2, :].astype(bf16)
    acc = jnp.dot(a0, wband_ref[0, 0], preferred_element_type=f32)
    acc = acc + jnp.dot(a1, wband_ref[0, 1], preferred_element_type=f32)
    acc = acc + jnp.dot(a2, wband_ref[0, 2], preferred_element_type=f32)
    acc = acc + bc_ref[0]                                                   # (H2, L) f32

    # ---- GroupNorm(G): fused single-pass statistics (f32) ------------------
    colsum = jnp.sum(acc, axis=0, keepdims=True)                            # (1, L)
    colsq = jnp.sum(acc * acc, axis=0, keepdims=True)                       # (1, L)
    # stack [colsum; colsq] without a sub-tile concat (broadcast + select is free VPU work)
    rows2 = lax.broadcasted_iota(jnp.int32, (2, L), 0)
    stats = jnp.where(rows2 == 0, colsum, colsq)                            # (2, L)
    g = jnp.dot(stats, mg_ref[...],
                preferred_element_type=f32) * (1.0 / n_per_group)           # (2, G): [mean; E[x^2]]
    bcast = jnp.dot(g, mgt_ref[...], preferred_element_type=f32)            # (2, L)
    mean_l = bcast[0:1]
    var_l = bcast[1:2] - mean_l * mean_l                                    # biased variance
    inv_l = lax.rsqrt(var_l + eps)
    act = jnp.maximum((acc - mean_l) * (inv_l * gam_ref[0]) + bet_ref[0], 0.0)

    @pl.when(layer < n_layers - 1)
    def _():
        plane_ref[1:H2 + 1, :] = act              # feed the next layer (VMEM-resident)

    @pl.when(layer == n_layers - 1)
    def _():
        o_ref[0] = act


# ---------------------------------------------------------------------------
# One-time weight preprocessing into band matrices (plain JAX, outside the kernel)
# ---------------------------------------------------------------------------
def _build_convT_band(wt_half, kh, W, Cout):
    """(Ch,2,2,Cout) convT weights -> (W*Ch, 2W*Cout) band matrix for sub-row parity kh."""
    sel = wt_half[:, kh]                        # (Ch, 2, Cout)
    w_in = jnp.arange(W)[:, None]
    w_out = jnp.arange(2 * W)[None, :]
    kw = w_out - 2 * w_in                       # (W, 2W)
    valid = ((kw >= 0) & (kw <= 1)).astype(jnp.float32)
    band = sel[:, jnp.clip(kw, 0, 1), :]        # (Ch, W, 2W, Cout)
    band = band * valid[None, :, :, None]
    band = jnp.transpose(band, (1, 0, 2, 3))    # (W, Ch, 2W, Cout)
    Ch = wt_half.shape[0]
    return band.reshape(W * Ch, 2 * W * Cout)


def _build_conv_band(wc_dh, W2):
    """(3, Cin, Cout) 3x3-conv weights at row offset dh -> (W2*Cin, W2*Cout) band matrix
    (block-tridiagonal: encodes the dw taps and the zero padding in w)."""
    Cin, Cout = wc_dh.shape[1], wc_dh.shape[2]
    w_in = jnp.arange(W2)[:, None]
    w_out = jnp.arange(W2)[None, :]
    dw = w_in - w_out + 1                       # (W2, W2)
    valid = ((dw >= 0) & (dw <= 2)).astype(jnp.float32)
    band = wc_dh[jnp.clip(dw, 0, 2)]            # (W2, W2, Cin, Cout)
    band = band * valid[:, :, None, None]
    band = jnp.transpose(band, (0, 2, 1, 3))    # (W2, Cin, W2, Cout)
    return band.reshape(W2 * Cin, W2 * Cout)


def make_params(key, in_channels, out_channels, H, W):
    G = 8
    assert out_channels % G == 0
    Ch = in_channels // 2
    Cout = out_channels
    H2, W2 = 2 * H, 2 * W
    L = W2 * Cout
    keys = jax.random.split(key, 32)
    ki = iter(range(32))
    params = {"cout": Cout}
    raw = {}

    # ConvTranspose2d(in_channels, out_channels, 2, 2) — synthetic weight kept in
    # (Cin, kh, kw, Cout) layout.  NOTE: PyTorch stores (Cin, Cout, kH, kW); permute
    # (0, 2, 3, 1) before this point if loading real checkpoints.
    wT = 0.1 * jax.random.normal(keys[next(ki)], (in_channels, 2, 2, Cout), jnp.float32)
    bT = 0.1 * jax.random.normal(keys[next(ki)], (Cout,), jnp.float32)
    raw["wT"], raw["bT"] = wT, bT
    # Merged convT band: rows [0, W*Ch) match the x lanes, rows [W*Ch, W*Cin) the skip
    # lanes of the lane-concatenated kernel input (== torch.cat((x, skip), 1)).
    bands = []
    for kh in (0, 1):
        bx = _build_convT_band(wT[:Ch], kh, W, Cout)
        bs = _build_convT_band(wT[Ch:], kh, W, Cout)
        bands.append(jnp.concatenate([bx, bs], axis=0))        # (W*Cin, L)
    params["atc"] = jnp.stack(bands).astype(jnp.bfloat16)       # (2, W*Cin, L) bf16
    params["btr"] = jnp.tile(bT, (W2,)).reshape(1, L)            # f32

    # 0/1 even/odd row-interleave matrix: output row r picks stacked row (r%2)*H + r//2
    r = jnp.arange(H2)
    j = jnp.arange(2 * H)
    params["psel"] = ((r[:, None] % 2) * H + r[:, None] // 2
                      == j[None, :]).astype(jnp.float32)         # (H2, 2H)

    # 6 x (Conv2d(3,1,1) + GroupNorm(8) + ReLU): Conv3 is 3 such layers, two Conv3 blocks.
    wbands, bias_rows, gamma_rows, beta_rows, raw_layers = [], [], [], [], []
    for _ in range(6):
        wc = 0.1 * jax.random.normal(keys[next(ki)], (3, 3, Cout, Cout), jnp.float32)
        b = 0.1 * jax.random.normal(keys[next(ki)], (Cout,), jnp.float32)
        gamma = 1.0 + 0.1 * jax.random.normal(keys[next(ki)], (Cout,), jnp.float32)
        beta = 0.1 * jax.random.normal(keys[next(ki)], (Cout,), jnp.float32)
        raw_layers.append((wc, b, gamma, beta))
        wbands.append(jnp.stack([_build_conv_band(wc[dh], W2) for dh in range(3)]))
        bias_rows.append(jnp.tile(b, (W2,)).reshape(1, L))
        gamma_rows.append(jnp.tile(gamma, (W2,)).reshape(1, L))
        beta_rows.append(jnp.tile(beta, (W2,)).reshape(1, L))
    params["wband"] = jnp.stack(wbands).astype(jnp.bfloat16)     # (6, 3, L, L) bf16
    params["bconv"] = jnp.stack(bias_rows)                       # (6, 1, L) f32
    params["gamma"] = jnp.stack(gamma_rows)                      # (6, 1, L) f32
    params["beta"] = jnp.stack(beta_rows)                        # (6, 1, L) f32
    raw["layers"] = raw_layers

    # lane <-> group 0/1 membership matrices for GroupNorm statistics
    lane_group = (jnp.arange(L) % Cout) // (Cout // G)
    mg = (lane_group[:, None] == jnp.arange(G)[None, :]).astype(jnp.float32)
    params["mg"] = mg          # (L, G)
    params["mgt"] = mg.T       # (G, L)
    params["raw"] = raw
    return params


# ---------------------------------------------------------------------------
# UnetUp forward (inputs/outputs in NCHW to match the PyTorch module)
# ---------------------------------------------------------------------------
def unet_up_forward(x_nchw, skip_nchw, params):
    N, Ch, H, W = x_nchw.shape
    Cout = params["cout"]
    Cin = 2 * Ch
    H2, W2 = 2 * H, 2 * W
    L = W2 * Cout
    G = params["mg"].shape[1]
    NL = params["wband"].shape[0]

    # NCHW -> lane-dense (N, H, W*C) row layout, x and skip concatenated along lanes
    # (boundary-only transposes; kernel matmul operands are bf16).
    x2 = jnp.transpose(x_nchw, (0, 2, 3, 1)).reshape(N, H, W * Ch)
    s2 = jnp.transpose(skip_nchw, (0, 2, 3, 1)).reshape(N, H, W * Ch)
    xcat = jnp.concatenate([x2, s2], axis=-1).astype(jnp.bfloat16)   # (N, H, W*Cin)

    flops = N * (2 * 2 * H * (W * Cin) * L           # convT (2 parities, K=W*Cin)
                 + 2 * H2 * (2 * H) * L              # row-interleave matmul
                 + NL * 3 * 2 * H2 * L * L)          # 6 x conv3x3 band matmuls
    bytes_accessed = (N * H * (W * Cin) * 2 + NL * 3 * L * L * 2
                      + 2 * (W * Cin) * L * 2 + N * H2 * L * 4)
    cost = pl.CostEstimate(flops=flops, transcendentals=N * NL * L,
                           bytes_accessed=bytes_accessed)

    out = pl.pallas_call(
        _fused_unet_up_kernel,
        out_shape=jax.ShapeDtypeStruct((N, H2, L), jnp.float32),
        grid=(N, NL),
        in_specs=[
            pl.BlockSpec((1, H, W * Cin), lambda n, l: (n, 0, 0)),       # x || skip
            pl.BlockSpec((2, W * Cin, L), lambda n, l: (0, 0, 0)),       # convT bands
            pl.BlockSpec((H2, 2 * H), lambda n, l: (0, 0)),              # interleave matrix
            pl.BlockSpec((1, L), lambda n, l: (0, 0)),                   # convT bias row
            pl.BlockSpec((1, 3, L, L), lambda n, l: (l, 0, 0, 0)),       # this layer's bands
            pl.BlockSpec((1, 1, L), lambda n, l: (l, 0, 0)),             # conv bias row
            pl.BlockSpec((1, 1, L), lambda n, l: (l, 0, 0)),             # GN gamma row
            pl.BlockSpec((1, 1, L), lambda n, l: (l, 0, 0)),             # GN beta row
            pl.BlockSpec((L, G), lambda n, l: (0, 0)),                   # lane -> group
            pl.BlockSpec((G, L), lambda n, l: (0, 0)),                   # group -> lane
        ],
        out_specs=pl.BlockSpec((1, H2, L), lambda n, l: (n, 0, 0)),
        scratch_shapes=[pltpu.VMEM((H2 + 2, L), jnp.float32)],
        compiler_params=pltpu.CompilerParams(
            # batch across TensorCores; the layer axis carries the VMEM-resident plane.
            dimension_semantics=("parallel", "arbitrary"),
            # explicit (conservative) scoped-VMEM budget; re-derive per generation
            # (v7x: <=~48-56 MiB of 64 MiB physical) when scaling beyond toy shapes.
            vmem_limit_bytes=32 * 1024 * 1024,
        ),
        cost_estimate=cost,
    )(xcat, params["atc"], params["psel"], params["btr"],
      params["wband"], params["bconv"], params["gamma"], params["beta"],
      params["mg"], params["mgt"])

    # lane layout -> NCHW (boundary-only)
    return jnp.transpose(out.reshape(N, H2, W2, Cout), (0, 3, 1, 2))


# ---------------------------------------------------------------------------
# Pure-JAX (XLA, f32) reference of the PyTorch UnetUp forward, for self-checking.
# ---------------------------------------------------------------------------
def _reference_forward(x, skip, raw):
    xin = jnp.concatenate([x, skip], axis=1)                     # (N, Cin, H, W)
    wT, bT = raw["wT"], raw["bT"]
    N, Cin, H, W = xin.shape
    Cout = wT.shape[-1]
    y = jnp.einsum('nchw,ckjo->nohkwj', xin, wT,
                   precision=lax.Precision.HIGHEST)              # (N,Cout,H,2,W,2)
    y = y.reshape(N, Cout, 2 * H, 2 * W) + bT[None, :, None, None]
    for (wc, b, gamma, beta) in raw["layers"]:
        y = lax.conv_general_dilated(y, wc, window_strides=(1, 1),
                                     padding=((1, 1), (1, 1)),
                                     dimension_numbers=('NCHW', 'HWIO', 'NCHW'),
                                     precision=lax.Precision.HIGHEST)
        y = y + b[None, :, None, None]
        G = 8
        n_, c_, h_, w_ = y.shape
        yg = y.reshape(n_, G, (c_ // G) * h_ * w_)
        mean = yg.mean(axis=-1, keepdims=True)
        var = ((yg - mean) ** 2).mean(axis=-1, keepdims=True)
        yg = (yg - mean) * lax.rsqrt(var + 1e-5)
        y = (yg.reshape(n_, c_, h_, w_) * gamma[None, :, None, None]
             + beta[None, :, None, None])
        y = jnp.maximum(y, 0.0)
    return y


if __name__ == "__main__":
    key = jax.random.PRNGKey(0)
    k_x, k_skip, k_p = jax.random.split(key, 3)

    # UnetUp(in_channels=16, out_channels=8); x and skip each carry 8 channels.
    # Chosen so the fused-kernel lane width 2W*Cout = 16*8 = 128 (one full lane).
    N, C_half, H, W = 2, 8, 8, 8
    in_channels, out_channels = 2 * C_half, 8

    x = jax.random.normal(k_x, (N, C_half, H, W), jnp.float32)
    skip = jax.random.normal(k_skip, (N, C_half, H, W), jnp.float32)
    params = make_params(k_p, in_channels, out_channels, H, W)

    out = unet_up_forward(x, skip, params)
    out = jax.block_until_ready(out)

    assert out.shape == (N, out_channels, 2 * H, 2 * W), out.shape
    assert bool(jnp.all(jnp.isfinite(out)))
    assert bool(jnp.all(out >= 0.0))   # last op is ReLU

    # Correctness self-check vs a pure-JAX f32 reference.  The kernel runs its matmuls
    # in bf16 (operands) with f32 accumulation, so use a relative-norm criterion plus a
    # loose max-abs bound (bf16 rounding accumulates ~1e-2 relative over 7 layers).
    ref = _reference_forward(x, skip, params["raw"])
    diff = out - ref
    rel_err = float(jnp.sqrt(jnp.sum(diff * diff)) / jnp.sqrt(jnp.sum(ref * ref)))
    max_err = float(jnp.max(jnp.abs(diff)))
    assert rel_err < 5e-2, f"relative error too large: {rel_err}"
    assert max_err < 2.0e-1, f"max abs error too large: {max_err}"

    print("KERNEL_OK")
</pallas_src>

<mosaic_0001>
module attributes {stable_mosaic.version = 11 : i64} {
  func.func @_fused_unet_up_kernel(%arg0: i32, %arg1: i32, %arg2: memref<1x8x128xbf16, #tpu.memory_space<vmem>>, %arg3: memref<2x128x128xbf16, #tpu.memory_space<vmem>>, %arg4: memref<16x16xf32, #tpu.memory_space<vmem>>, %arg5: memref<1x128xf32, #tpu.memory_space<vmem>>, %arg6: memref<1x3x128x128xbf16, #tpu.memory_space<vmem>>, %arg7: memref<1x1x128xf32, #tpu.memory_space<vmem>>, %arg8: memref<1x1x128xf32, #tpu.memory_space<vmem>>, %arg9: memref<1x1x128xf32, #tpu.memory_space<vmem>>, %arg10: memref<128x8xf32, #tpu.memory_space<vmem>>, %arg11: memref<8x128xf32, #tpu.memory_space<vmem>>, %arg12: memref<1x16x128xf32, #tpu.memory_space<vmem>>, %arg13: memref<18x128xf32, #tpu.memory_space<vmem>>) attributes {dimension_semantics = [#tpu.dimension_semantics<parallel>, #tpu.dimension_semantics<arbitrary>], iteration_bounds = array<i64: 2, 6>, scalar_prefetch = 0 : i64, scratch_operands = 1 : i64, tpu.core_type = #tpu.core_type<tc>, window_params = [{transform_indices = @transform_0, window_bounds = array<i64: 1, 8, 128>}, {pipeline_mode = #tpu.pipeline_mode<synchronous>, transform_indices = @transform_1, window_bounds = array<i64: 2, 128, 128>}, {pipeline_mode = #tpu.pipeline_mode<synchronous>, transform_indices = @transform_2, window_bounds = array<i64: 16, 16>}, {pipeline_mode = #tpu.pipeline_mode<synchronous>, transform_indices = @transform_3, window_bounds = array<i64: 1, 128>}, {transform_indices = @transform_4, window_bounds = array<i64: 1, 3, 128, 128>}, {transform_indices = @transform_5, window_bounds = array<i64: 1, 1, 128>}, {transform_indices = @transform_6, window_bounds = array<i64: 1, 1, 128>}, {transform_indices = @transform_7, window_bounds = array<i64: 1, 1, 128>}, {pipeline_mode = #tpu.pipeline_mode<synchronous>, transform_indices = @transform_8, window_bounds = array<i64: 128, 8>}, {pipeline_mode = #tpu.pipeline_mode<synchronous>, transform_indices = @transform_9, window_bounds = array<i64: 8, 128>}, {transform_indices = @transform_10, window_bounds = array<i64: 1, 16, 128>}]} {
    %c0_i32 = arith.constant 0 : i32
    %0 = arith.cmpi eq, %arg1, %c0_i32 : i32
    %1 = arith.extui %0 : i1 to i32
    %c0_i32_0 = arith.constant 0 : i32
    %2 = arith.cmpi ne, %1, %c0_i32_0 : i32
    scf.if %2 {
      %c0_42 = arith.constant 0 : index
      %c0_43 = arith.constant 0 : index
      %c0_44 = arith.constant 0 : index
      %69 = vector.load %arg2[%c0_42, %c0_43, %c0_44] : memref<1x8x128xbf16, #tpu.memory_space<vmem>>, vector<1x8x128xbf16>
      %70 = vector.shape_cast %69 : vector<1x8x128xbf16> to vector<8x128xbf16>
      %c0_45 = arith.constant 0 : index
      %c0_46 = arith.constant 0 : index
      %c0_47 = arith.constant 0 : index
      %71 = vector.load %arg3[%c0_45, %c0_46, %c0_47] : memref<2x128x128xbf16, #tpu.memory_space<vmem>>, vector<1x128x128xbf16>
      %72 = vector.shape_cast %71 : vector<1x128x128xbf16> to vector<128x128xbf16>
      %cst_48 = arith.constant dense<0.000000e+00> : vector<8x128xf32>
      %73 = tpu.matmul %70, %72, %cst_48 {dimension_numbers = #tpu.dot_dimension_numbers<[1], [0], [0], [1], [0, 0, 1, 1], [], []>} : vector<8x128xbf16>, vector<128x128xbf16>, vector<8x128xf32> -> vector<8x128xf32>
      %c1_49 = arith.constant 1 : index
      %c0_50 = arith.constant 0 : index
      %c0_51 = arith.constant 0 : index
      %74 = vector.load %arg3[%c1_49, %c0_50, %c0_51] : memref<2x128x128xbf16, #tpu.memory_space<vmem>>, vector<1x128x128xbf16>
      %75 = vector.shape_cast %74 : vector<1x128x128xbf16> to vector<128x128xbf16>
      %cst_52 = arith.constant dense<0.000000e+00> : vector<8x128xf32>
      %76 = tpu.matmul %70, %75, %cst_52 {dimension_numbers = #tpu.dot_dimension_numbers<[1], [0], [0], [1], [0, 0, 1, 1], [], []>} : vector<8x128xbf16>, vector<128x128xbf16>, vector<8x128xf32> -> vector<8x128xf32>
      %77 = tpu.concatenate %73, %76 in 0 : vector<8x128xf32>, vector<8x128xf32> -> vector<16x128xf32>
      %c0_53 = arith.constant 0 : index
      %c0_54 = arith.constant 0 : index
      %78 = vector.load %arg4[%c0_53, %c0_54] : memref<16x16xf32, #tpu.memory_space<vmem>>, vector<16x16xf32>
      %cst_55 = arith.constant dense<0.000000e+00> : vector<16x128xf32>
      %79 = tpu.matmul %78, %77, %cst_55 {dimension_numbers = #tpu.dot_dimension_numbers<[1], [0], [0], [1], [0, 0, 1, 1], [], []>} : vector<16x16xf32>, vector<16x128xf32>, vector<16x128xf32> -> vector<16x128xf32>
      %c0_56 = arith.constant 0 : index
      %c0_57 = arith.constant 0 : index
      %80 = vector.load %arg5[%c0_56, %c0_57] : memref<1x128xf32, #tpu.memory_space<vmem>>, vector<1x128xf32>
      %81 = vector.broadcast %80 : vector<1x128xf32> to vector<16x128xf32>
      %82 = arith.addf %79, %81 : vector<16x128xf32>
      %cst_58 = arith.constant 0.000000e+00 : f32
      %83 = vector.broadcast %cst_58 : f32 to vector<1x128xf32>
      %c0_59 = arith.constant 0 : index
      %c0_60 = arith.constant 0 : index
      %84 = vector.load %arg13[%c0_59, %c0_60] : memref<18x128xf32, #tpu.memory_space<vmem>>, vector<1x128xf32>
      tpu.vector_store %arg13[%c0_59, %c0_60], %83 {strides = array<i32>} : memref<18x128xf32, #tpu.memory_space<vmem>>, vector<1x128xf32>,
      %c17 = arith.constant 17 : index
      %c0_61 = arith.constant 0 : index
      %85 = vector.load %arg13[%c17, %c0_61] : memref<18x128xf32, #tpu.memory_space<vmem>>, vector<1x128xf32>
      tpu.vector_store %arg13[%c17, %c0_61], %83 {strides = array<i32>} : memref<18x128xf32, #tpu.memory_space<vmem>>, vector<1x128xf32>,
      %c1_62 = arith.constant 1 : index
      %c0_63 = arith.constant 0 : index
      %86 = vector.load %arg13[%c1_62, %c0_63] : memref<18x128xf32, #tpu.memory_space<vmem>>, vector<16x128xf32>
      tpu.vector_store %arg13[%c1_62, %c0_63], %82 {strides = array<i32>} : memref<18x128xf32, #tpu.memory_space<vmem>>, vector<16x128xf32>,
    } else {
    }
    %c0 = arith.constant 0 : index
    %c0_1 = arith.constant 0 : index
    %3 = vector.load %arg13[%c0, %c0_1] : memref<18x128xf32, #tpu.memory_space<vmem>>, vector<16x128xf32>
    %4 = arith.truncf %3 : vector<16x128xf32> to vector<16x128xbf16>
    %c1 = arith.constant 1 : index
    %c0_2 = arith.constant 0 : index
    %5 = vector.load %arg13[%c1, %c0_2] : memref<18x128xf32, #tpu.memory_space<vmem>>, vector<16x128xf32>
    %6 = arith.truncf %5 : vector<16x128xf32> to vector<16x128xbf16>
    %c2 = arith.constant 2 : index
    %c0_3 = arith.constant 0 : index
    %7 = vector.load %arg13[%c2, %c0_3] : memref<18x128xf32, #tpu.memory_space<vmem>>, vector<16x128xf32>
    %8 = arith.truncf %7 : vector<16x128xf32> to vector<16x128xbf16>
    %c0_4 = arith.constant 0 : index
    %c0_5 = arith.constant 0 : index
    %c0_6 = arith.constant 0 : index
    %c0_7 = arith.constant 0 : index
    %9 = vector.load %arg6[%c0_4, %c0_5, %c0_6, %c0_7] : memref<1x3x128x128xbf16, #tpu.memory_space<vmem>>, vector<1x1x128x128xbf16>
    %10 = vector.shape_cast %9 : vector<1x1x128x128xbf16> to vector<128x128xbf16>
    %cst = arith.constant dense<0.000000e+00> : vector<16x128xf32>
    %11 = tpu.matmul %4, %10, %cst {dimension_numbers = #tpu.dot_dimension_numbers<[1], [0], [0], [1], [0, 0, 1, 1], [], []>} : vector<16x128xbf16>, vector<128x128xbf16>, vector<16x128xf32> -> vector<16x128xf32>
    %c0_8 = arith.constant 0 : index
    %c1_9 = arith.constant 1 : index
    %c0_10 = arith.constant 0 : index
    %c0_11 = arith.constant 0 : index
    %12 = vector.load %arg6[%c0_8, %c1_9, %c0_10, %c0_11] : memref<1x3x128x128xbf16, #tpu.memory_space<vmem>>, vector<1x1x128x128xbf16>
    %13 = vector.shape_cast %12 : vector<1x1x128x128xbf16> to vector<128x128xbf16>
    %cst_12 = arith.constant dense<0.000000e+00> : vector<16x128xf32>
    %14 = tpu.matmul %6, %13, %cst_12 {dimension_numbers = #tpu.dot_dimension_numbers<[1], [0], [0], [1], [0, 0, 1, 1], [], []>} : vector<16x128xbf16>, vector<128x128xbf16>, vector<16x128xf32> -> vector<16x128xf32>
    %15 = arith.addf %11, %14 : vector<16x128xf32>
    %c0_13 = arith.constant 0 : index
    %c2_14 = arith.constant 2 : index
    %c0_15 = arith.constant 0 : index
    %c0_16 = arith.constant 0 : index
    %16 = vector.load %arg6[%c0_13, %c2_14, %c0_15, %c0_16] : memref<1x3x128x128xbf16, #tpu.memory_space<vmem>>, vector<1x1x128x128xbf16>
    %17 = vector.shape_cast %16 : vector<1x1x128x128xbf16> to vector<128x128xbf16>
    %cst_17 = arith.constant dense<0.000000e+00> : vector<16x128xf32>
    %18 = tpu.matmul %8, %17, %cst_17 {dimension_numbers = #tpu.dot_dimension_numbers<[1], [0], [0], [1], [0, 0, 1, 1], [], []>} : vector<16x128xbf16>, vector<128x128xbf16>, vector<16x128xf32> -> vector<16x128xf32>
    %19 = arith.addf %15, %18 : vector<16x128xf32>
    %c0_18 = arith.constant 0 : index
    %c0_19 = arith.constant 0 : index
    %c0_20 = arith.constant 0 : index
    %20 = vector.load %arg7[%c0_18, %c0_19, %c0_20] : memref<1x1x128xf32, #tpu.memory_space<vmem>>, vector<1x1x128xf32>
    %21 = vector.shape_cast %20 : vector<1x1x128xf32> to vector<1x128xf32>
    %22 = vector.broadcast %21 : vector<1x128xf32> to vector<16x128xf32>
    %23 = arith.addf %19, %22 : vector<16x128xf32>
    %cst_21 = arith.constant dense<0.000000e+00> : vector<128xf32>
    %24 = vector.multi_reduction <add>, %23, %cst_21 [0] : vector<16x128xf32> to vector<128xf32>
    %25 = vector.shape_cast %24 : vector<128xf32> to vector<1x128xf32>
    %26 = arith.mulf %23, %23 : vector<16x128xf32>
    %cst_22 = arith.constant dense<0.000000e+00> : vector<128xf32>
    %27 = vector.multi_reduction <add>, %26, %cst_22 [0] : vector<16x128xf32> to vector<128xf32>
    %28 = vector.shape_cast %27 : vector<128xf32> to vector<1x128xf32>
    %29 = tpu.iota {dimensions = array<i32: 0>} : vector<2x128xi32>
    %c0_i32_23 = arith.constant 0 : i32
    %30 = vector.broadcast %c0_i32_23 : i32 to vector<2x128xi32>
    %31 = arith.cmpi eq, %29, %30 : vector<2x128xi32>
    %32 = vector.shape_cast %25 : vector<1x128xf32> to vector<1x128xf32>
    %33 = vector.broadcast %32 : vector<1x128xf32> to vector<2x128xf32>
    %34 = vector.shape_cast %28 : vector<1x128xf32> to vector<1x128xf32>
    %35 = vector.broadcast %34 : vector<1x128xf32> to vector<2x128xf32>
    %36 = arith.select %31, %33, %35 : vector<2x128xi1>, vector<2x128xf32>
    %c0_24 = arith.constant 0 : index
    %c0_25 = arith.constant 0 : index
    %37 = vector.load %arg10[%c0_24, %c0_25] : memref<128x8xf32, #tpu.memory_space<vmem>>, vector<128x8xf32>
    %cst_26 = arith.constant dense<0.000000e+00> : vector<2x8xf32>
    %38 = tpu.matmul %36, %37, %cst_26 {dimension_numbers = #tpu.dot_dimension_numbers<[1], [0], [0], [1], [0, 0, 1, 1], [], []>} : vector<2x128xf32>, vector<128x8xf32>, vector<2x8xf32> -> vector<2x8xf32>
    %cst_27 = arith.constant 3.906250e-03 : f32
    %39 = vector.broadcast %cst_27 : f32 to vector<2x8xf32>
    %40 = arith.mulf %38, %39 : vector<2x8xf32>
    %c0_28 = arith.constant 0 : index
    %c0_29 = arith.constant 0 : index
    %41 = vector.load %arg11[%c0_28, %c0_29] : memref<8x128xf32, #tpu.memory_space<vmem>>, vector<8x128xf32>
    %cst_30 = arith.constant dense<0.000000e+00> : vector<2x128xf32>
    %42 = tpu.matmul %40, %41, %cst_30 {dimension_numbers = #tpu.dot_dimension_numbers<[1], [0], [0], [1], [0, 0, 1, 1], [], []>} : vector<2x8xf32>, vector<8x128xf32>, vector<2x128xf32> -> vector<2x128xf32>
    %43 = vector.extract_strided_slice %42 {offsets = [0, 0], sizes = [1, 128], strides = [1, 1]} : vector<2x128xf32> to vector<1x128xf32>
    %44 = vector.extract_strided_slice %42 {offsets = [1, 0], sizes = [1, 128], strides = [1, 1]} : vector<2x128xf32> to vector<1x128xf32>
    %45 = arith.mulf %43, %43 : vector<1x128xf32>
    %46 = arith.subf %44, %45 : vector<1x128xf32>
    %cst_31 = arith.constant 9.99999974E-6 : f32
    %47 = vector.broadcast %cst_31 : f32 to vector<1x128xf32>
    %48 = arith.addf %46, %47 : vector<1x128xf32>
    %49 = math.rsqrt %48 : vector<1x128xf32>
    %50 = vector.broadcast %43 : vector<1x128xf32> to vector<16x128xf32>
    %51 = arith.subf %23, %50 : vector<16x128xf32>
    %c0_32 = arith.constant 0 : index
    %c0_33 = arith.constant 0 : index
    %c0_34 = arith.constant 0 : index
    %52 = vector.load %arg8[%c0_32, %c0_33, %c0_34] : memref<1x1x128xf32, #tpu.memory_space<vmem>>, vector<1x1x128xf32>
    %53 = vector.shape_cast %52 : vector<1x1x128xf32> to vector<1x128xf32>
    %54 = arith.mulf %49, %53 : vector<1x128xf32>
    %55 = vector.broadcast %54 : vector<1x128xf32> to vector<16x128xf32>
    %56 = arith.mulf %51, %55 : vector<16x128xf32>
    %c0_35 = arith.constant 0 : index
    %c0_36 = arith.constant 0 : index
    %c0_37 = arith.constant 0 : index
    %57 = vector.load %arg9[%c0_35, %c0_36, %c0_37] : memref<1x1x128xf32, #tpu.memory_space<vmem>>, vector<1x1x128xf32>
    %58 = vector.shape_cast %57 : vector<1x1x128xf32> to vector<1x128xf32>
    %59 = vector.broadcast %58 : vector<1x128xf32> to vector<16x128xf32>
    %60 = arith.addf %56, %59 : vector<16x128xf32>
    %cst_38 = arith.constant 0.000000e+00 : f32
    %61 = vector.broadcast %cst_38 : f32 to vector<16x128xf32>
    %62 = arith.maximumf %60, %61 : vector<16x128xf32>
    %c5_i32 = arith.constant 5 : i32
    %63 = arith.cmpi slt, %arg1, %c5_i32 : i32
    %64 = arith.extui %63 : i1 to i32
    %c0_i32_39 = arith.constant 0 : i32
    %65 = arith.cmpi ne, %64, %c0_i32_39 : i32
    scf.if %65 {
      %c1_42 = arith.constant 1 : index
      %c0_43 = arith.constant 0 : index
      %69 = vector.load %arg13[%c1_42, %c0_43] : memref<18x128xf32, #tpu.memory_space<vmem>>, vector<16x128xf32>
      tpu.vector_store %arg13[%c1_42, %c0_43], %62 {strides = array<i32>} : memref<18x128xf32, #tpu.memory_space<vmem>>, vector<16x128xf32>,
    } else {
    }
    %c5_i32_40 = arith.constant 5 : i32
    %66 = arith.cmpi eq, %arg1, %c5_i32_40 : i32
    %67 = arith.extui %66 : i1 to i32
    %c0_i32_41 = arith.constant 0 : i32
    %68 = arith.cmpi ne, %67, %c0_i32_41 : i32
    scf.if %68 {
      %c0_42 = arith.constant 0 : index
      %c0_43 = arith.constant 0 : index
      %c0_44 = arith.constant 0 : index
      %69 = vector.load %arg12[%c0_42, %c0_43, %c0_44] : memref<1x16x128xf32, #tpu.memory_space<vmem>>, vector<1x16x128xf32>
      %70 = vector.shape_cast %69 : vector<1x16x128xf32> to vector<16x128xf32>
      %71 = vector.shape_cast %62 : vector<16x128xf32> to vector<1x16x128xf32>
      tpu.vector_store %arg12[%c0_42, %c0_43, %c0_44], %71 {strides = array<i32>} : memref<1x16x128xf32, #tpu.memory_space<vmem>>, vector<1x16x128xf32>,
    } else {
    }
    return
  }
  func.func @transform_0(%arg0: i32, %arg1: i32) -> (i32, i32, i32) {
    %c0_i32 = arith.constant 0 : i32
    %c0_i32_0 = arith.constant 0 : i32
    %c0_i32_1 = arith.constant 0 : i32
    return %arg0, %c0_i32, %c0_i32_0 : i32, i32, i32
  }
  func.func @transform_1(%arg0: i32, %arg1: i32) -> (i32, i32, i32) {
    %c0_i32 = arith.constant 0 : i32
    %c0_i32_0 = arith.constant 0 : i32
    %c0_i32_1 = arith.constant 0 : i32
    %c0_i32_2 = arith.constant 0 : i32
    return %c0_i32, %c0_i32_0, %c0_i32_1 : i32, i32, i32
  }
  func.func @transform_2(%arg0: i32, %arg1: i32) -> (i32, i32) {
    %c0_i32 = arith.constant 0 : i32
    %c0_i32_0 = arith.constant 0 : i32
    %c0_i32_1 = arith.constant 0 : i32
    return %c0_i32, %c0_i32_0 : i32, i32
  }
  func.func @transform_3(%arg0: i32, %arg1: i32) -> (i32, i32) {
    %c0_i32 = arith.constant 0 : i32
    %c0_i32_0 = arith.constant 0 : i32
    %c0_i32_1 = arith.constant 0 : i32
    return %c0_i32, %c0_i32_0 : i32, i32
  }
  func.func @transform_4(%arg0: i32, %arg1: i32) -> (i32, i32, i32, i32) {
    %c0_i32 = arith.constant 0 : i32
    %c0_i32_0 = arith.constant 0 : i32
    %c0_i32_1 = arith.constant 0 : i32
    %c0_i32_2 = arith.constant 0 : i32
    return %arg1, %c0_i32, %c0_i32_0, %c0_i32_1 : i32, i32, i32, i32
  }
  func.func @transform_5(%arg0: i32, %arg1: i32) -> (i32, i32, i32) {
    %c0_i32 = arith.constant 0 : i32
    %c0_i32_0 = arith.constant 0 : i32
    %c0_i32_1 = arith.constant 0 : i32
    return %arg1, %c0_i32, %c0_i32_0 : i32, i32, i32
  }
  func.func @transform_6(%arg0: i32, %arg1: i32) -> (i32, i32, i32) {
    %c0_i32 = arith.constant 0 : i32
    %c0_i32_0 = arith.constant 0 : i32
    %c0_i32_1 = arith.constant 0 : i32
    return %arg1, %c0_i32, %c0_i32_0 : i32, i32, i32
  }
  func.func @transform_7(%arg0: i32, %arg1: i32) -> (i32, i32, i32) {
    %c0_i32 = arith.constant 0 : i32
    %c0_i32_0 = arith.constant 0 : i32
    %c0_i32_1 = arith.constant 0 : i32
    return %arg1, %c0_i32, %c0_i32_0 : i32, i32, i32
  }
  func.func @transform_8(%arg0: i32, %arg1: i32) -> (i32, i32) {
    %c0_i32 = arith.constant 0 : i32
    %c0_i32_0 = arith.constant 0 : i32
    %c0_i32_1 = arith.constant 0 : i32
    return %c0_i32, %c0_i32_0 : i32, i32
  }
  func.func @transform_9(%arg0: i32, %arg1: i32) -> (i32, i32) {
    %c0_i32 = arith.constant 0 : i32
    %c0_i32_0 = arith.constant 0 : i32
    %c0_i32_1 = arith.constant 0 : i32
    return %c0_i32, %c0_i32_0 : i32, i32
  }
  func.func @transform_10(%arg0: i32, %arg1: i32) -> (i32, i32, i32) {
    %c0_i32 = arith.constant 0 : i32
    %c0_i32_0 = arith.constant 0 : i32
    %c0_i32_1 = arith.constant 0 : i32
    return %arg0, %c0_i32, %c0_i32_0 : i32, i32, i32
  }
}

</mosaic_0001>

<bundles_post_ra>
// kernel: tpu_custom_call.1
= control target key start
LH: loop header
LB: loop body
LE: loop exit
PB: predicated region body
PF: predicated region fallthrough
CT: control target
= control target key end

     0   :  { %s3007_s0 = inlined_call_operand.vmem [shape: bf16[2,8,128], index: 0, kind: input, shape index: {}]   ;;  %s3008_s1 = inlined_call_operand.vmem [shape: bf16[2,128,128], index: 1, kind: input, shape index: {}]   ;;  %s3009_s2 = inlined_call_operand.hbm [shape: f32[16,16], index: 2, kind: input, shape index: {}]   ;;  %s3010_s3 = inlined_call_operand.hbm [shape: f32[1,128], index: 3, kind: input, shape index: {}]   ;;  %s3011_s4 = inlined_call_operand.hbm [shape: bf16[6,3,128,128], index: 4, kind: input, shape index: {}]   ;;  %s3012_s5 = inlined_call_operand.hbm [shape: f32[6,1,128], index: 5, kind: input, shape index: {}]   ;;  %s3013_s6 = inlined_call_operand.vmem [shape: f32[6,1,128], index: 6, kind: input, shape index: {}]   ;;  %s3014_s7 = inlined_call_operand.hbm [shape: f32[6,1,128], index: 7, kind: input, shape index: {}]   ;;  %s3015_s8 = inlined_call_operand.vmem [shape: f32[128,8], index: 8, kind: input, shape index: {}]   ;;  %s3016_s9 = inlined_call_operand.vmem [shape: f32[8,128], index: 9, kind: input, shape index: {}]   ;;  %s3017_s10 = inlined_call_operand.hbm [shape: f32[2,16,128], index: 10, kind: output, shape index: {}]  }
   0x1   :  { %3043 = sst [smem:[#allocation27_spill]] %s3007_s0 }
   0x2   :  { %3044 = sst [smem:[#allocation28_spill]] %s3008_s1 }
   0x3   :  { %3045 = sst [smem:[#allocation29_spill]] %s3009_s2 }
   0x4   :  { %3046 = sst [smem:[#allocation30_spill]] %s3011_s4 }
   0x5   :  { %3047 = sst [smem:[#allocation31_spill]] %s3013_s6 }
   0x6   :  { %3048 = sst [smem:[#allocation32_spill]] %s3015_s8 }
   0x7   :  { %3049 = sst [smem:[#allocation33_spill]] %s3016_s9 }
   0x8   :  { %3050 = sst [smem:[#allocation34_spill]] %s3017_s10 }
   0x9   :  { %15 = vsyncpa [#allocation4], 0 }
   0xa   :  { %16 = vsyncpa [#allocation7], 0 }
   0xb   :  { %17 = vsyncpa [#allocation5], 0 }
   0xc   :  { %19 = vsyncpa [#allocation5 + $0x1], 0  ;;  %s2459_s13 = smov 0   ;;  %s2461_s14 = smov 0  }
   0xd   :  { %s2463_s15 = smov 0   ;;  %s2465_s16 = smov 0  }
   0xe   :  { %s2467_s17 = smov 0   ;;  %s2469_s18 = smov 0  }
   0xf   :  { %s2471_s19 = smov 0   ;;  %s2473_s20 = smov 0  }
  0x10   :  { %s2475_s21 = smov 0   ;;  %s2477_s22 = smov 0  }
  0x11   :  { %s2479_s23 = smov 0  }
  0x12 LB: > { %3051 = sst [smem:[#allocation16_spill]] %s2345_s13  ;;  %s2513_s24 = sadd.s32 4294967295, %s2385_s23   ;;  %s2385_s23 = sphi %s2479_s23, %s25_s23   ;;  %s2381_s22 = sphi %s2477_s22, %s3108_s22   ;;  %s2377_s21 = sphi %s2475_s21, %s3115_s21   ;;  %s2373_s20 = sphi %s2473_s20, %s3106_s20   ;;  %s2369_s19 = sphi %s2471_s19, %s3114_s19   ;;  %s2365_s18 = sphi %s2469_s18, %s3105_s18   ;;  %s2361_s17 = sphi %s2467_s17, %s3113_s17   ;;  %s2357_s16 = sphi %s2465_s16, %s3112_s16   ;;  %s2353_s15 = sphi %s2463_s15, %s3111_s15   ;;  %s2349_s14 = sphi %s2461_s14, %s3110_s14   ;;  %s2345_s13 = sphi %s2459_s13, %s3109_s13  }
  0x13   : > { %3052 = sst [smem:[#allocation17_spill]] %s2365_s18  ;;  %s1560_s25 = sadd.s32 4294967294, %s2385_s23  }
  0x14   : > { %3053 = sst [smem:[#allocation18_spill]] %s2369_s19  ;;  %p140_p0 = scmp.ne.s32.totalorder %s2365_s18, %s2361_s17 }
  0x15   : > { %3054 = sst [smem:[#allocation19_spill]] %s2381_s22  ;;  %p141_p1 = scmp.eq.s32.totalorder %s2385_s23, 0 }
  0x16   : > { %3055 = sst [smem:[#allocation20_spill]] %s2385_s23  ;;  %p146_p2 = scmp.ne.s32.totalorder %s2361_s17, %s2357_s16 }
  0x17   : > { %p3024_p3 = scmp.eq.s32.totalorder %s2513_s24, 0  ;;  %p2523_p4 = por %p141_p1, %p140_p0 }
  0x18   : > { %p289_p5 = scmp.ne.s32.totalorder %s2353_s15, %s2349_s14  ;;  %p290_p7 = scmp.eq.s32.totalorder %s2513_s24, 11 }
  0x19   : > { %p2531_p6 = por %p3024_p3, %p146_p2  ;;  %p295_p8 = scmp.ne.s32.totalorder %s2349_s14, %s2345_s13 }
  0x1a   : > { %p296_p9 = scmp.eq.s32.totalorder %s1560_s25, 11  ;;  %p2538_p10 = por %p290_p7, %p289_p5 }
  0x1b   : > { %s3057_s29 = scalar_select %p2531_p6, 1, 0 }
  0x1c   : > { %s3058_s30 = scalar_select %p2538_p10, 1, 0 }
  0x1d   : > { %p1561_p11 = scmp.ge.s32.totalorder %s2385_s23, 1  ;;  %p2543_p12 = por %p296_p9, %p295_p8 }
  0x1e   : > { %3059 = sst [smem:[#allocation21_spill]] %s3058_s30  ;;  %p303_p13 = scmp.lt.s32.totalorder %s2385_s23, 13 }
  0x1f   : > { %s3060_s11 = scalar_select %p2543_p12, 1, 0 }
  0x20   : > { %p2548_p0 = pnand %p1561_p11, %p303_p13  ;;  %s2387_s16 = smov [#allocation3]  }
  0x21   : > { %3061 = sst [smem:[#allocation22_spill]] %s3060_s11  ;;  %s318_s27 = sshll.u32 %s2387_s16, 4  ;;  %s319_s27 = int_to_ptr.vmem [resolvable:$true] %s318_s27 }
  0x22   : > { %s3062_s12 = scalar_select %p2548_p0, 1, 0 }
  0x23   : > { %p1939_p1 = pneg %p2548_p0  ;;  %p1962_p2 = scmp.lt.s32.totalorder %s2385_s23, 12 }
  0x24   : > { %s3065_s2 = sld [smem:[#allocation29_spill]] }
  0x25   : > { %p2557_p5 = pnand %p1939_p1, %p3024_p3  ;;  %p2563_p7 = pnand %p1962_p2, %p2523_p4 }
  0x27   : > { %s3063_s25 = scalar_select %p2557_p5, 1, 0 }
  0x28   : > { %s3064_s26 = scalar_select %p2563_p7, 1, 0 }
  0x29   : > { %p3035_p9 = pneg %p2557_p5 }
  0x2a   : > { %s2109_s16 = scalar_lea.hbm %s3065_s2, 256 }
  0x2b   : > { %p2110_p8 = scmp.ne.s32.totalorder %s3065_s2, %s2109_s16  ;;  %p2116_p4 = scmp.lt.u32.totalorder %s2109_s16, %s3065_s2 }
  0x2d   : > { %p2112_p11 = pnand %p3035_p9, %p2110_p8 }
  0x2f   : > { %p2113_p13 = pneg %p2112_p11 }
  0x31   : > { %p2118_p1 = pnand %p2116_p4, %p2113_p13 }
  0x33   : > { %2121 = shalt.err (!%p2118_p1)
}
  0x34   : > { %s2122_s8 = scalar_lea.vmem %s319_s27, 256  ;;  %p2130_p10 = scmp.lt.s32.totalorder %s319_s27, %s319_s27 }
  0x35   : > { %p2123_p2 = scmp.ne.s32.totalorder %s319_s27, %s2122_s8  ;;  %p2131_p6 = scmp.lt.s32.totalorder %s2122_s8, %s2122_s8 }
  0x37   : > { %p2125_p3 = pnand %p2123_p2, %p3035_p9  ;;  %p2132_p0 = por %p2131_p6, %p2130_p10 }
  0x39   : > { %p2126_p12 = pneg %p2125_p3 }
  0x3b   : > { %p2133_p7 = pnand %p2132_p0, %p2126_p12 }
  0x3d   : > { %2136 = shalt.err (!%p2133_p7)
}
  0x3e   : > { %s2388_s10 = smov 128   ;;  %s2389_s9 = smov 8  }
  0x3f   : > { %1942 = dma.hbm_to_vmem [thread:$0]  (!%p2557_p5), %s3065_s2, 256, %s319_s27, [#allocation4], %s2388_s10, %s2388_s10, %s2389_s9  }
  0x40   : > { %s34_s8 = sadd.s32 1, %s2377_s21  ;;  %s37_s11 = sadd.s32 1, %s2381_s22 }
  0x41   : > { %p35_p3 = scmp.ge.s32.totalorder %s34_s8, 6  ;;  %s356_s16 = sand.u32 1, %s2385_s23  }
  0x42   : > { %s2593_s28 = sand.u32 1, %s2365_s18   ;;  %s1921_s13 = smul.u32 3072, %s2377_s21 }
  0x43   : > { %s3117_s8 = smov (%p35_p3, %s34_s8), 0  ;;  %s3119_s11 = smov (!%p35_p3, %s37_s11), %s2381_s22 }
  0x44   : > { %3066 = sst [smem:[#allocation23_spill]] %s3117_s8  ;;  %s130_s1 = ssub.s32 %s2377_s21, %s3117_s8 }
  0x45   : > { %s1920_s6 = smul.u32 192, %s2593_s28  ;;  %p39_p6 = scmp.ge.s32.totalorder %s3119_s11, 2 }
  0x46   : > { %p131_p10 = scmp.eq.s32.totalorder %s130_s1, 0  ;;  %s3068_s27 = sadd.s32 1, %s2365_s18 }
  0x47   : > { %s3121_s11 = smov (%p39_p6, %s3119_s11), 0  ;;  %s3070_s4 = sld [smem:[#allocation30_spill]] }
  0x48   : > { %3067 = sst [smem:[#allocation24_spill]] %s3121_s11  ;;  %s276_s9 = ssub.s32 %s2381_s22, %s3121_s11 }
  0x49   : > { %s2607_s10 = scalar_select %p131_p10, %s2365_s18, %s3068_s27  }
  0x4a   : > { %p277_p12 = scmp.eq.s32.totalorder %s276_s9, 0  ;;  %s360_s8 = scalar_lea.vmem [#allocation8], %s1920_s6 }
  0x4b   : > { %3069 = sst [smem:[#allocation25_spill]] %s2607_s10  ;;  %s367_s1 = sshll.u32 %s360_s8, 4  ;;  %s2616_s1 = int_to_ptr.vmem [resolvable:$true] %s367_s1 }
  0x4c   : > { %s3071_s0 = sadd.s32 1, %s2353_s15  ;;  %s2623_s27 = scalar_lea.sflag [#allocation4], %s356_s16 }
  0x4d   : > { %s2614_s23 = scalar_lea.hbm %s3070_s4, %s1921_s13  ;;  %p3073_p7 = scmp.ne.s32.totalorder %s3064_s26, 0 }
  0x4e   : > { %s2621_s19 = scalar_select %p277_p12, %s2353_s15, %s3071_s0  }
  0x4f   : > { %s2137_s11 = scalar_lea.hbm %s2614_s23, 3072  ;;  %p2629_p8 = pneg %p3073_p7 }
  0x50   : > { %3072 = sst [smem:[#allocation26_spill]] %s2621_s19  ;;  %p2138_p0 = scmp.ne.s32.totalorder %s2614_s23, %s2137_s11 }
  0x51   : > { %s3074_s2 = scalar_select %p2629_p8, 1, 0 }
  0x52   : > { %p2140_p11 = pnand %p2629_p8, %p2138_p0  ;;  %s2142_s13 = scalar_lea.hbm %s3070_s4, 18432 }
  0x53   : > { %p2143_p4 = scmp.lt.u32.totalorder %s2614_s23, %s3070_s4  ;;  %p2144_p1 = scmp.lt.u32.totalorder %s2142_s13, %s2137_s11 }
  0x54   : > { %p2141_p13 = pneg %p2140_p11  ;;  %p2146_p3 = scmp.lt.u32.totalorder %s2137_s11, %s2614_s23 }
  0x55   : > { %p2145_p2 = por %p2144_p1, %p2143_p4 }
  0x57   : > { %p2147_p6 = por %p2146_p3, %p2145_p2 }
  0x59   : > { %p2148_p10 = pnand %p2147_p6, %p2141_p13 }
  0x5b   : > { %2151 = shalt.err (!%p2148_p10)
}
  0x5c   : > { %s2152_s16 = scalar_lea.vmem %s2616_s1, 3072  ;;  %s2390_s30 = smov [#allocation8]  }
  0x5d   : > { %p2153_p12 = scmp.ne.s32.totalorder %s2616_s1, %s2152_s16  ;;  %s2157_s6 = sshll.u32 %s2390_s30, 4  ;;  %s2158_s6 = int_to_ptr.vmem [resolvable:$false] %s2157_s6 }
  0x5e   : > { %s2159_s8 = scalar_lea.vmem %s2158_s6, 6144  ;;  %p2160_p9 = scmp.lt.s32.totalorder %s2616_s1, %s2158_s6 }
  0x5f   : > { %p2155_p0 = pnand %p2153_p12, %p2629_p8  ;;  %p2161_p5 = scmp.lt.s32.totalorder %s2159_s8, %s2152_s16 }
  0x61   : > { %p2156_p11 = pneg %p2155_p0  ;;  %p2162_p4 = por %p2161_p5, %p2160_p9 }
  0x63   : > { %p2163_p1 = pnand %p2162_p4, %p2156_p11 }
  0x65   : > { %2166 = shalt.err (!%p2163_p1)
}
  0x66   : > { %s2391_s11 = smov 64   ;;  %s2392_s13 = smov 4  }
  0x67   : > { %1949 = dma.hbm_to_vmem [thread:$0]  (!%p3073_p7), %s2614_s23, 3072, %s2616_s1, %s2623_s27, %s2391_s11, %s2391_s11, %s2392_s13  }
  0x68   : > { %s1566_s9 = sshll.u32 %s2377_s21, 4  ;;  %s380_s0 = scalar_lea.vmem [#allocation9], %s2593_s28 }
  0x69   : > { %s387_s30 = sshll.u32 %s380_s0, 4  ;;  %s385_s8 = scalar_lea.hbm %s3012_s5, %s1566_s9  ;;  %s388_s30 = int_to_ptr.vmem [resolvable:$true] %s387_s30 }
  0x6a   : > { %s2167_s4 = scalar_lea.hbm %s385_s8, 16  ;;  %s2172_s18 = scalar_lea.hbm %s3012_s5, 96 }
  0x6b   : > { %p2168_p5 = scmp.ne.s32.totalorder %s385_s8, %s2167_s4  ;;  %p2173_p2 = scmp.lt.u32.totalorder %s385_s8, %s3012_s5 }
  0x6c   : > { %p2174_p3 = scmp.lt.u32.totalorder %s2172_s18, %s2167_s4  ;;  %p2176_p10 = scmp.lt.u32.totalorder %s2167_s4, %s385_s8 }
  0x6d   : > { %p2170_p9 = pnand %p2168_p5, %p2629_p8 }
  0x6e   : > { %p2175_p6 = por %p2174_p3, %p2173_p2 }
  0x6f   : > { %p2171_p13 = pneg %p2170_p9 }
  0x70   : > { %p2177_p12 = por %p2176_p10, %p2175_p6 }
  0x72   : > { %p2178_p0 = pnand %p2177_p12, %p2171_p13 }
  0x74   : > { %2181 = shalt.err (!%p2178_p0)
}
  0x75   : > { %s2182_s1 = scalar_lea.vmem %s388_s30, 16  ;;  %s2393_s11 = smov [#allocation9]  }
  0x76   : > { %p2183_p11 = scmp.ne.s32.totalorder %s388_s30, %s2182_s1  ;;  %s2187_s13 = sshll.u32 %s2393_s11, 4  ;;  %s2188_s13 = int_to_ptr.vmem [resolvable:$false] %s2187_s13 }
  0x77   : > { %s2189_s22 = scalar_lea.vmem %s2188_s13, 32  ;;  %p2190_p5 = scmp.lt.s32.totalorder %s388_s30, %s2188_s13 }
  0x78   : > { %p2185_p4 = pnand %p2183_p11, %p2629_p8  ;;  %p2191_p9 = scmp.lt.s32.totalorder %s2189_s22, %s2182_s1 }
  0x7a   : > { %p2186_p1 = pneg %p2185_p4  ;;  %p2192_p7 = por %p2191_p9, %p2190_p5 }
  0x7c   : > { %p2193_p2 = pnand %p2192_p7, %p2186_p1 }
  0x7e   : > { %2196 = shalt.err (!%p2193_p2)
}
  0x7f   : > { %p3075_p3 = scmp.ne.s32.totalorder %s3064_s26, 0  ;;  %s2394_s4 = smov [#allocation6]  }
  0x80   : > { %s332_s18 = sshll.u32 %s2394_s4, 4  ;;  %s2678_s0 = scalar_lea.hbm %s3014_s7, %s1566_s9  ;;  %s333_s18 = int_to_ptr.vmem [resolvable:$true] %s332_s18 }
  0x81   : > { %1952 = dma.hbm_to_vmem [thread:$0]  (!%p3075_p3), %s385_s8, 16, %s388_s30, %s2623_s27  }
  0x82   : > { %s403_s16 = scalar_lea.vmem [#allocation10], %s2593_s28  ;;  %s2197_s11 = scalar_lea.hbm %s3010_s3, 16 }
  0x83   : > { %s410_s6 = sshll.u32 %s403_s16, 4  ;;  %p2198_p7 = scmp.ne.s32.totalorder %s3010_s3, %s2197_s11  ;;  %s411_s6 = int_to_ptr.vmem [resolvable:$true] %s410_s6 }
  0x84   : > { %p3076_p13 = scmp.ne.s32.totalorder %s3063_s25, 0  ;;  %p2204_p0 = scmp.lt.u32.totalorder %s2197_s11, %s3010_s3 }
  0x86   : > { %p3077_p6 = pneg %p3076_p13 }
  0x88   : > { %p2200_p10 = pnand %p2198_p7, %p3077_p6 }
  0x8a   : > { %p2201_p12 = pneg %p2200_p10 }
  0x8c   : > { %p2206_p11 = pnand %p2204_p0, %p2201_p12 }
  0x8e   : > { %2209 = shalt.err (!%p2206_p11)
}
  0x8f   : > { %s2210_s28 = scalar_lea.vmem %s333_s18, 16  ;;  %p3078_p1 = pmov %p3077_p6 }
  0x90   : > { %p2211_p4 = scmp.ne.s32.totalorder %s333_s18, %s2210_s28  ;;  %s2217_s9 = scalar_lea.vmem %s333_s18, 32 }
  0x91   : > { %p2218_p2 = scmp.lt.s32.totalorder %s333_s18, %s333_s18  ;;  %p2219_p3 = scmp.lt.s32.totalorder %s2217_s9, %s2210_s28 }
  0x92   : > { %p2213_p5 = pnand %p2211_p4, %p3078_p1 }
  0x93   : > { %p2220_p8 = por %p2219_p3, %p2218_p2 }
  0x94   : > { %p2214_p9 = pneg %p2213_p5 }
  0x96   : > { %p2221_p6 = pnand %p2220_p8, %p2214_p9 }
  0x98   : > { %2224 = shalt.err (!%p2221_p6)
}
  0x99   : > { %1945 = dma.hbm_to_vmem [thread:$0]  (!%p3076_p13), %s3010_s3, 16, %s333_s18, [#allocation7]  }
  0x9a   : > { %s2225_s10 = scalar_lea.hbm %s2678_s0, 16  ;;  %p3079_p10 = scmp.ne.s32.totalorder %s3074_s2, 0 }
  0x9b   : > { %p2226_p7 = scmp.ne.s32.totalorder %s2678_s0, %s2225_s10  ;;  %s2230_s1 = scalar_lea.hbm %s3014_s7, 96 }
  0x9c   : > { %p2231_p8 = scmp.lt.u32.totalorder %s2678_s0, %s3014_s7  ;;  %p2232_p3 = scmp.lt.u32.totalorder %s2230_s1, %s2225_s10 }
  0x9d   : > { %p2228_p12 = pnand %p2226_p7, %p3079_p10  ;;  %p2234_p4 = scmp.lt.u32.totalorder %s2225_s10, %s2678_s0 }
  0x9e   : > { %p2233_p11 = por %p2232_p3, %p2231_p8 }
  0x9f   : > { %p2229_p0 = pneg %p2228_p12 }
  0xa0   : > { %p2235_p1 = por %p2234_p4, %p2233_p11 }
  0xa2   : > { %p2236_p5 = pnand %p2235_p1, %p2229_p0 }
  0xa4   : > { %2239 = shalt.err (!%p2236_p5)
}
  0xa5   : > { %s2240_s18 = scalar_lea.vmem %s411_s6, 16  ;;  %s2395_s13 = smov [#allocation10]  }
  0xa6   : > { %p2241_p13 = scmp.ne.s32.totalorder %s411_s6, %s2240_s18  ;;  %s2245_s22 = sshll.u32 %s2395_s13, 4  ;;  %s2246_s22 = int_to_ptr.vmem [resolvable:$false] %s2245_s22 }
  0xa7   : > { %s2247_s30 = scalar_lea.vmem %s2246_s22, 32  ;;  %p2248_p6 = scmp.lt.s32.totalorder %s411_s6, %s2246_s22 }
  0xa8   : > { %p2243_p9 = pnand %p2241_p13, %p3079_p10  ;;  %p2249_p7 = scmp.lt.s32.totalorder %s2247_s30, %s2240_s18 }
  0xaa   : > { %p2244_p2 = pneg %p2243_p9  ;;  %p2250_p12 = por %p2249_p7, %p2248_p6 }
  0xac   : > { %p2251_p3 = pnand %p2250_p12, %p2244_p2 }
  0xae   : > { %2254 = shalt.err (!%p2251_p3)
}
  0xaf   : > { %p3080_p8 = scmp.ne.s32.totalorder %s3064_s26, 0  ;;  %p3081_p0 = scmp.ne.s32.totalorder %s3062_s12, 0 }
  0xb0   : > { %p3082_p10 = scmp.eq.s32.totalorder (!%p3081_p0), %s2513_s24, 0 }
  0xb1   : > { %1955 = dma.hbm_to_vmem [thread:$0]  (!%p3080_p8), %s2678_s0, 16, %s411_s6, %s2623_s27  }
  0xb2   : > { %419 = sbr.rel (%p3081_p0) target bundleno = 1473 (0x5c1), region = 60 }
  0xb9   : > { %2328 = dma.done.wait (%p3082_p10), [#allocation4], 256   ;;  %p3083_p11 = pmov %p3082_p10 }
  0xba   : > { %p3084_p4 = pmov %p3082_p10 }
  0xbb   : > { %2330 = vsyncadd (%p3083_p11), [#allocation4], 4294967040 }
  0xbc   : > { %2332 = dma.done.wait (%p3084_p4), [#allocation7], 16   ;;  %p3085_p1 = pmov %p3084_p4 }
  0xbd   : > { %s429_s26 = sand.u32 1, %s2513_s24   ;;  %s2731_s27 = sand.u32 1, %s2361_s17  }
  0xbe   : > { %2334 = vsyncadd (%p3085_p1), [#allocation7], 4294967280  ;;  %s1922_s12 = smul.u32 192, %s2731_s27  ;;  %s430_s2 = scalar_lea.sflag [#allocation4], %s429_s26 }
  0xbf   : > { %p3086_p5 = scmp.ne.s32.totalorder %s3057_s29, 0 }
  0xc0   : > { %s2734_s0 = scalar_lea.vmem [#allocation8], %s1922_s12 }
  0xc1   : > { %2336 = dma.done.wait (%p3086_p5), %s430_s2, 3104  }
  0xc2   : > { %2338 = vsyncadd (%p3086_p5), %s430_s2, 4294964192  ;;  %s3087_s6 = sld [smem:[#allocation18_spill]]  ;;  %s498_s24 = sand.u32 1, %s2349_s14  }
  0xc3   : > { %p501_p13 = scmp.lt.s32.totalorder %s2373_s20, 1  ;;  %s1571_s8 = sshll.u32 %s498_s24, 4 }
  0xc4   : > { %s3088_s10 = sld [smem:[#allocation27_spill]]  ;;  %s3089_s25 = sld [smem:[#allocation31_spill]] }
  0xc5   : > { %s502_s28 = scalar_select %p501_p13, %s2373_s20, 1 }
  0xc6   : > { %s441_s18 = scalar_lea.vmem [#allocation9], %s2731_s27  ;;  %s449_s13 = scalar_lea.vmem [#allocation10], %s2731_s27 }
  0xc7   : > { %s1572_s4 = sshll.u32 %s502_s28, 2  ;;  %s2760_s22 = scalar_lea.vmem [#allocation11], %s1571_s8 }
  0xc8   : > { %p505_p9 = scmp.lt.s32.totalorder %s3087_s6, 5  ;;  %p1573_p2 = scmp.ne.s32.totalorder %s3087_s6, 0 }
  0xc9   : > { %s3090_s12 = sld [smem:[#allocation28_spill]] (!%p1573_p2)  ;;  %v2396_v1 = vmov (!%p1573_p2), 0.0   ;;  %vm2397_vm0 = vmmov (!%p1573_p2), 0   ;;  %v723_v18 = vld [vmem:[#allocation3] sm:$0xff] (!%p1573_p2)  ;;  %vm732_vm1 = vcmask (!%p1573_p2), 130048   ;;  %v724_v28 = vld [vmem:[#allocation3 + $0x8] sm:$0xff] (!%p1573_p2) }
  0xca   : > { %s2747_s9 = scalar_select %p505_p9, %s3087_s6, 5 }
  0xcb   : > { %s2752_s16 = scalar_lea.vmem %s3088_s10, %s1572_s4  ;;  %512 = sbr.rel (%p1573_p2) target bundleno = 674 (0x2a2), region = 84  ;;  %1745 = vmatprep.subr.bf16.mxu0 (!%p1573_p2), %v2396_v1  ;;  %814 = vst [vmem:[#allocation2] sm:$0x1] (!%p1573_p2), %v2396_v1  ;;  %815 = vst [vmem:[#allocation2 + $0x11] sm:$0x1] (!%p1573_p2), %v2396_v1  ;;  %1765 = vmatprep.subr.bf16.mxu1 (!%p1573_p2), %v2396_v1 }
  0xcc   : > { %s507_s11 = scalar_lea.vmem %s3089_s25, %s2747_s9  ;;  %1761 = vmatprep.mubr.msk.bf16.mxu0 (!%p1573_p2), %vm2397_vm0, %v2396_v1  ;;  %1781 = vmatprep.mubr.msk.bf16.mxu1 (!%p1573_p2), %vm2397_vm0, %v2396_v1  ;;  %v513_v17 = vld [vmem:[%s2752_s16] sm:$0xf] (!%p1573_p2)  ;;  %v1606_v29 = vld [vmem:[#allocation6] ss:$0 sm:$0xff] (!%p1573_p2) }
  0xcf   : > { %v2067_v0 = vld [vmem:[%s3090_s12] sm:$0xff] (!%p1573_p2)   ;;  %v2069_v3 = vld [vmem:[%s3090_s12 + $0x8] sm:$0xff] (!%p1573_p2)   ;;  %v2071_v5 = vld [vmem:[%s3090_s12 + $0x10] sm:$0xff] (!%p1573_p2)  }
  0xd0   : > { %v2068_v2 = vld [vmem:[%s3090_s12 + $0x40] sm:$0xff] (!%p1573_p2)   ;;  %1746 = vmatpush3.bf16.msra.mxu0 (!%p1573_p2), %v2067_v0  ;;  %v2070_v4 = vld [vmem:[%s3090_s12 + $0x48] sm:$0xff] (!%p1573_p2)   ;;  %v2072_v6 = vld [vmem:[%s3090_s12 + $0x50] sm:$0xff] (!%p1573_p2)  }
  0xd1   : > { %1766 = vmatpush3.bf16.msra.mxu1 (!%p1573_p2), %v2068_v2  ;;  %1747 = vmatprep.subr.bf16.mxu0 (!%p1573_p2), %v2396_v1  ;;  %v2073_v7 = vld [vmem:[%s3090_s12 + $0x18] sm:$0xff] (!%p1573_p2)   ;;  %v2075_v9 = vld [vmem:[%s3090_s12 + $0x20] sm:$0xff] (!%p1573_p2)   ;;  %v2077_v11 = vld [vmem:[%s3090_s12 + $0x28] sm:$0xff] (!%p1573_p2)  }
  0xd2   : > { %1767 = vmatprep.subr.bf16.mxu1 %v2396_v1  ;;  %v2074_v8 = vld [vmem:[%s3090_s12 + $0x58] sm:$0xff]   ;;  %v2076_v10 = vld [vmem:[%s3090_s12 + $0x60] sm:$0xff]   ;;  %v2078_v12 = vld [vmem:[%s3090_s12 + $0x68] sm:$0xff]  }
  0xd3   : > { %v2079_v13 = vld [vmem:[%s3090_s12 + $0x30] sm:$0xff]   ;;  %v2081_v15 = vld [vmem:[%s3090_s12 + $0x38] sm:$0xff]  }
  0xd4   : > { %1748 = vmatpush3.bf16.msra.mxu0 %v2069_v3  ;;  %v2080_v14 = vld [vmem:[%s3090_s12 + $0x70] sm:$0xff]   ;;  %v2082_v16 = vld [vmem:[%s3090_s12 + $0x78] sm:$0xff]  }
  0xd5   : > { %1768 = vmatpush3.bf16.msra.mxu1 %v2070_v4  ;;  %1749 = vmatprep.subr.bf16.mxu0 %v2396_v1 }
  0xd6   : > { %1769 = vmatprep.subr.bf16.mxu1 %v2396_v1 }
  0xd8   : > { %1750 = vmatpush3.bf16.msra.mxu0 %v2071_v5 }
  0xd9   : > { %1770 = vmatpush3.bf16.msra.mxu1 %v2072_v6  ;;  %1751 = vmatprep.subr.bf16.mxu0 %v2396_v1 }
  0xda   : > { %1771 = vmatprep.subr.bf16.mxu1 %v2396_v1 }
  0xdc   : > { %1752 = vmatpush3.bf16.msra.mxu0 %v2073_v7 }
  0xdd   : > { %1772 = vmatpush3.bf16.msra.mxu1 %v2074_v8  ;;  %1753 = vmatprep.subr.bf16.mxu0 %v2396_v1 }
  0xde   : > { %1773 = vmatprep.subr.bf16.mxu1 %v2396_v1 }
  0xe0   : > { %1754 = vmatpush3.bf16.msra.mxu0 %v2075_v9 }
  0xe1   : > { %1774 = vmatpush3.bf16.msra.mxu1 %v2076_v10  ;;  %1755 = vmatprep.subr.bf16.mxu0 %v2396_v1 }
  0xe2   : > { %1775 = vmatprep.subr.bf16.mxu1 %v2396_v1 }
  0xe4   : > { %1756 = vmatpush3.bf16.msra.mxu0 %v2077_v11 }
  0xe5   : > { %1776 = vmatpush3.bf16.msra.mxu1 %v2078_v12  ;;  %1757 = vmatprep.subr.bf16.mxu0 %v2396_v1 }
  0xe6   : > { %1777 = vmatprep.subr.bf16.mxu1 %v2396_v1 }
  0xe8   : > { %1758 = vmatpush3.bf16.msra.mxu0 %v2079_v13 }
  0xe9   : > { %1778 = vmatpush3.bf16.msra.mxu1 %v2080_v14  ;;  %1759 = vmatprep.subr.bf16.mxu0 %v2396_v1 }
  0xea   : > { %1779 = vmatprep.subr.bf16.mxu1 %v2396_v1 }
  0xec   : > { %1760 = vmatpush3.bf16.msra.mxu0 %v2081_v15 }
  0xed   : > { %1780 = vmatpush3.bf16.msra.mxu1 %v2082_v16 }
  0xef   : > { %1762 = vmatmul.mubr.bf16.vlgmr.msra.gmra.mrb[0].mxu0 %v513_v17 }
  0xf0   : > { %1782 = vmatmul.mubr.bf16.vlgmr.msra.gmra.mrb[0].mxu1 %v513_v17  ;;  %1789 = vmatprep.mubr.msk.f32.mxu0 %vm732_vm1, %v723_v18 }
 0x1c2   : > { %v612_v19 = vpop.f32.mrb[0].mxu0 }
 0x1c3   : > { %v717_v20 = vpop.f32.mrb[0].mxu1  ;;  %v1763_v21 = vpop.f32.mrb[1].mxu0 }
 0x1c4   : > { %v1892_v22 = vpack.c.bf16 %v717_v20, %v612_v19  ;;  %v1783_v23 = vpop.f32.mrb[1].mxu1  ;;  %v615_v24 = vpop.f32.mrb[2].mxu0 }
 0x1c5   : > { %v720_v25 = vpop.f32.mrb[2].mxu1  ;;  %v1764_v26 = vpop.f32.mrb[3].mxu0 }
 0x1c6   : > { %v1784_v27 = vpop.f32.mrb[3].mxu1  ;;  %1893 = vmatprep.subr.bf16.mxu0 %v1892_v22 }
 0x1c7   : > { %1895 = vmatpush3.bf16.msra.mxu0 %v1892_v22 }
 0x1ca   : > { %1790 = vmatmul.mubr.msk.f32.vlgmr.msra.gmra.mrb[4].mxu0 %vm732_vm1, %v724_v28 }
 0x29d   : > { %v1791_v30 = vpop.f32.mrb[4].mxu0 }
 0x29e   : > { %v811_v31 = vadd.f32 %v1791_v30, %v1606_v29  ;;  %v805_v32 = vpop.f32.mrb[5].mxu0 }
 0x29f   : > { %v806_v33 = vadd.f32 %v1606_v29, %v805_v32 }
 0x2a0   : > { %817 = vst [vmem:[#allocation2 + $0x9] sm:$0xff] %v811_v31 }
 0x2a1   : > { %816 = vst [vmem:[#allocation2 + $0x1] sm:$0xff] %v806_v33 }
 0x2a2 PF: > { %v2083_v34 = vld [vmem:[%s2734_s0 + $0x40] sm:$0xff]   ;;  %v2398_v35 = vmov 0.0   ;;  %v2085_v37 = vld [vmem:[%s2734_s0 + $0x48] sm:$0xff]   ;;  %vm2399_vm2 = vmmov 0   ;;  %v2087_v39 = vld [vmem:[%s2734_s0 + $0x50] sm:$0xff]   ;;  %s3091_s29 = sld [smem:[#allocation32_spill]] }
 0x2a3   : > { %1792 = vmatprep.subr.bf16.mxu0 %v2398_v35  ;;  %1812 = vmatprep.subr.bf16.mxu1 %v2398_v35  ;;  %v2084_v36 = vld [vmem:[%s2734_s0] sm:$0xff]   ;;  %v2086_v38 = vld [vmem:[%s2734_s0 + $0x8] sm:$0xff]   ;;  %v2088_v40 = vld [vmem:[%s2734_s0 + $0x10] sm:$0xff]   ;;  %v2400_v7 = vmov 0.0|0.0   ;;  %s3092_s1 = sld [smem:[#allocation33_spill]]  ;;  %vm1263_vm4 = vcmask 64512  }
 0x2a4   : > { %1793 = vmatpush3.bf16.msra.mxu0 %v2083_v34  ;;  %1808 = vmatprep.mubr.msk.bf16.mxu0 %vm2399_vm2, %v2398_v35  ;;  %v2089_v41 = vld [vmem:[%s2734_s0 + $0x58] sm:$0xff]   ;;  %v2091_v43 = vld [vmem:[%s2734_s0 + $0x60] sm:$0xff]   ;;  %v2093_v45 = vld [vmem:[%s2734_s0 + $0x68] sm:$0xff]   ;;  %s3094_s26 = sld [smem:[#allocation18_spill]] }
 0x2a5   : > { %1813 = vmatpush3.bf16.msra.mxu1 %v2084_v36  ;;  %1794 = vmatprep.subr.bf16.mxu0 %v2398_v35  ;;  %v2090_v42 = vld [vmem:[%s2734_s0 + $0x18] sm:$0xff]   ;;  %v2092_v44 = vld [vmem:[%s2734_s0 + $0x20] sm:$0xff]   ;;  %v2094_v46 = vld [vmem:[%s2734_s0 + $0x28] sm:$0xff]  }
 0x2a6   : > { %1814 = vmatprep.subr.bf16.mxu1 %v2398_v35  ;;  %1828 = vmatprep.mubr.msk.bf16.mxu1 %vm2399_vm2, %v2398_v35  ;;  %v2095_v47 = vld [vmem:[%s2734_s0 + $0x70] sm:$0xff]   ;;  %v2097_v49 = vld [vmem:[%s2734_s0 + $0x78] sm:$0xff]   ;;  %v2099_v57 = vld [vmem:[%s2734_s0 + $0x80] sm:$0xff]  }
 0x2a7   : > { %v2096_v48 = vld [vmem:[%s2734_s0 + $0x30] sm:$0xff]   ;;  %v822_v51 = vld [vmem:[#allocation2 + $0x9] sm:$0xff]  ;;  %v2100_v58 = vld [vmem:[%s2734_s0 + $0x88] sm:$0xff]  }
 0x2a8   : > { %1795 = vmatpush3.bf16.msra.mxu0 %v2085_v37  ;;  %v821_v50 = vld [vmem:[#allocation2 + $0x1] sm:$0xff]  ;;  %v2103_v61 = vld [vmem:[%s2734_s0 + $0xa0] sm:$0xff]   ;;  %v2104_v62 = vld [vmem:[%s2734_s0 + $0xa8] sm:$0xff]  }
 0x2a9   : > { %1815 = vmatpush3.bf16.msra.mxu1 %v2086_v38  ;;  %1796 = vmatprep.subr.bf16.mxu0 %v2398_v35  ;;  %v2098_v52 = vld [vmem:[%s2734_s0 + $0x38] sm:$0xff]   ;;  %v823_v55 = vpack.c.bf16 %v822_v51, %v821_v50  ;;  %v2101_v59 = vld [vmem:[%s2734_s0 + $0x90] sm:$0xff]   ;;  %v825_v2 = vld [vmem:[#allocation2 + $0xa] sm:$0xff] }
 0x2aa   : > { %1816 = vmatprep.subr.bf16.mxu1 %v2398_v35  ;;  %v818_v53 = vld [vmem:[#allocation2] sm:$0xff]  ;;  %v819_v54 = vld [vmem:[#allocation2 + $0x8] sm:$0xff]  ;;  %v1177_v6 = vld [vmem:[%s3091_s29 + $0x10] sm:$0xff]  ;;  %p1669_p6 = scmp.ge.s32.totalorder %s3094_s26, 5 }
 0x2ab   : > { %v820_v56 = vpack.c.bf16 %v819_v54, %v818_v53  ;;  %v2102_v60 = vld [vmem:[%s2734_s0 + $0x98] sm:$0xff]   ;;  %v2105_v63 = vld [vmem:[%s2734_s0 + $0xb0] sm:$0xff]   ;;  %v1181_v14 = vld [vmem:[%s3091_s29 + $0x30] sm:$0xff] }
 0x2ac   : > { %1797 = vmatpush3.bf16.msra.mxu0 %v2087_v39  ;;  %v2106_v0 = vld [vmem:[%s2734_s0 + $0xb8] sm:$0xff]   ;;  %v1178_v9 = vld [vmem:[%s3091_s29 + $0x18] sm:$0xff]  ;;  %v1185_v20 = vld [vmem:[%s3091_s29 + $0x50] sm:$0xff] }
 0x2ad   : > { %1817 = vmatpush3.bf16.msra.mxu1 %v2088_v40  ;;  %1798 = vmatprep.subr.bf16.mxu0 %v2398_v35  ;;  %v824_v1 = vld [vmem:[#allocation2 + $0x2] sm:$0xff]  ;;  %v1900_v10 = vpack.c.bf16 %v1178_v9, %v1177_v6  ;;  %v1182_v15 = vld [vmem:[%s3091_s29 + $0x38] sm:$0xff]  ;;  %v1189_v26 = vld [vmem:[%s3091_s29 + $0x70] sm:$0xff] }
 0x2ae   : > { %1818 = vmatprep.subr.bf16.mxu1 %v2398_v35  ;;  %v826_v3 = vpack.c.bf16 %v825_v2, %v824_v1  ;;  %v1175_v4 = vld [vmem:[%s3091_s29] sm:$0xff]  ;;  %v1176_v5 = vld [vmem:[%s3091_s29 + $0x8] sm:$0xff]  ;;  %v1906_v16 = vpack.c.bf16 %v1182_v15, %v1181_v14  ;;  %v1186_v21 = vld [vmem:[%s3091_s29 + $0x58] sm:$0xff] }
 0x2af   : > { %v1897_v8 = vpack.c.bf16 %v1176_v5, %v1175_v4  ;;  %v1179_v11 = vld [vmem:[%s3091_s29 + $0x20] sm:$0xff]  ;;  %v1180_v12 = vld [vmem:[%s3091_s29 + $0x28] sm:$0xff]  ;;  %v1912_v22 = vpack.c.bf16 %v1186_v21, %v1185_v20  ;;  %v1190_v27 = vld [vmem:[%s3091_s29 + $0x78] sm:$0xff] }
 0x2b0   : > { %1799 = vmatpush3.bf16.msra.mxu0 %v2089_v41  ;;  %v1903_v13 = vpack.c.bf16 %v1180_v12, %v1179_v11  ;;  %v1183_v17 = vld [vmem:[%s3091_s29 + $0x40] sm:$0xff]  ;;  %v1184_v18 = vld [vmem:[%s3091_s29 + $0x48] sm:$0xff]  ;;  %v1918_v28 = vpack.c.bf16 %v1190_v27, %v1189_v26 }
 0x2b1   : > { %1819 = vmatpush3.bf16.msra.mxu1 %v2090_v42  ;;  %1800 = vmatprep.subr.bf16.mxu0 %v2398_v35  ;;  %v1909_v19 = vpack.c.bf16 %v1184_v18, %v1183_v17  ;;  %v1187_v23 = vld [vmem:[%s3091_s29 + $0x60] sm:$0xff]  ;;  %v1188_v24 = vld [vmem:[%s3091_s29 + $0x68] sm:$0xff] }
 0x2b2   : > { %1820 = vmatprep.subr.bf16.mxu1 %v2398_v35  ;;  %v1915_v25 = vpack.c.bf16 %v1188_v24, %v1187_v23  ;;  %v1665_v41 = vld [vmem:[%s441_s18] ss:$0 sm:$0xff] }
 0x2b3   : > { %v1667_v15 = vld [vmem:[%s507_s11] ss:$0 sm:$0xff] }
 0x2b4   : > { %1801 = vmatpush3.bf16.msra.mxu0 %v2091_v43 }
 0x2b5   : > { %1821 = vmatpush3.bf16.msra.mxu1 %v2092_v44  ;;  %1802 = vmatprep.subr.bf16.mxu0 %v2398_v35 }
 0x2b6   : > { %1822 = vmatprep.subr.bf16.mxu1 %v2398_v35 }
 0x2b8   : > { %1803 = vmatpush3.bf16.msra.mxu0 %v2093_v45 }
 0x2b9   : > { %1823 = vmatpush3.bf16.msra.mxu1 %v2094_v46  ;;  %1804 = vmatprep.subr.bf16.mxu0 %v2398_v35 }
 0x2ba   : > { %1824 = vmatprep.subr.bf16.mxu1 %v2398_v35 }
 0x2bc   : > { %1805 = vmatpush3.bf16.msra.mxu0 %v2095_v47 }
 0x2bd   : > { %1825 = vmatpush3.bf16.msra.mxu1 %v2096_v48  ;;  %1806 = vmatprep.subr.bf16.mxu0 %v2398_v35 }
 0x2be   : > { %1826 = vmatprep.subr.bf16.mxu1 %v2398_v35 }
 0x2c0   : > { %1807 = vmatpush3.bf16.msra.mxu0 %v2097_v49 }
 0x2c1   : > { %1827 = vmatpush3.bf16.msra.mxu1 %v2098_v52  ;;  %1832 = vmatprep.subr.bf16.mxu0 %v2398_v35 }
 0x2c2   : > { %1896 = vmatprep.subr.bf16.mxu1 %v2400_v7 }
 0x2c3   : > { %1809 = vmatmul.mubr.bf16.vlgmr.msra.gmra.mrb[0].mxu0 %v823_v55 }
 0x2c4   : > { %1829 = vmatmul.mubr.bf16.vlgmr.msra.gmra.mrb[0].mxu1 %v820_v56  ;;  %1833 = vmatpush3.bf16.msra.mxu0 %v2099_v57  ;;  %v1171_v56 = vlaneseq }
 0x2c5   : > { %1834 = vmatprep.subr.bf16.mxu0 %v2398_v35  ;;  %1848 = vmatprep.mubr.msk.bf16.mxu0 %vm2399_vm2, %v2398_v35 }
 0x2c6   : > { %1884 = vmatprep.mubr.msk.f32.mxu1 %vm2399_vm2, %v2398_v35  ;;  %1898 = vmatpush3.bf16.msra.mxu1 %v1897_v8 }
 0x2c7   : > { %1899 = vmatprep.subr.bf16.mxu1 %v2400_v7 }
 0x2c8   : > { %1835 = vmatpush3.bf16.msra.mxu0 %v2100_v58 }
 0x2c9   : > { %1836 = vmatprep.subr.bf16.mxu0 %v2398_v35 }
 0x2ca   : > { %1901 = vmatpush3.bf16.msra.mxu1 %v1900_v10 }
 0x2cb   : > { %1902 = vmatprep.subr.bf16.mxu1 %v2400_v7 }
 0x2cc   : > { %1837 = vmatpush3.bf16.msra.mxu0 %v2101_v59 }
 0x2cd   : > { %1838 = vmatprep.subr.bf16.mxu0 %v2398_v35 }
 0x2ce   : > { %1904 = vmatpush3.bf16.msra.mxu1 %v1903_v13 }
 0x2cf   : > { %1905 = vmatprep.subr.bf16.mxu1 %v2400_v7 }
 0x2d0   : > { %1839 = vmatpush3.bf16.msra.mxu0 %v2102_v60 }
 0x2d1   : > { %1840 = vmatprep.subr.bf16.mxu0 %v2398_v35 }
 0x2d2   : > { %1907 = vmatpush3.bf16.msra.mxu1 %v1906_v16 }
 0x2d3   : > { %1908 = vmatprep.subr.bf16.mxu1 %v2400_v7 }
 0x2d4   : > { %1841 = vmatpush3.bf16.msra.mxu0 %v2103_v61  ;;  %v1172_v61 = vshrl.u32 %v1171_v56, 7 }
 0x2d5   : > { %1842 = vmatprep.subr.bf16.mxu0 %v2398_v35 }
 0x2d6   : > { %1910 = vmatpush3.bf16.msra.mxu1 %v1909_v19  ;;  %vm1173_vm3 = vcmp.eq.s32.totalorder %v1172_v61, 0  ;;  %v1346_v14 = vsub.s32 0, %v1172_v61  ;;  %v1360_v16 = vsub.s32 1, %v1172_v61 }
 0x2d7   : > { %1911 = vmatprep.subr.bf16.mxu1 %v2400_v7 }
 0x2d8   : > { %1843 = vmatpush3.bf16.msra.mxu0 %v2104_v62 }
 0x2d9   : > { %1844 = vmatprep.subr.bf16.mxu0 %v2398_v35 }
 0x2da   : > { %1913 = vmatpush3.bf16.msra.mxu1 %v1912_v22  ;;  %v1668_v22 = vld [vmem:[%s449_s13] ss:$0 sm:$0xff] }
 0x2db   : > { %1914 = vmatprep.subr.bf16.mxu1 %v2400_v7 }
 0x2dc   : > { %1845 = vmatpush3.bf16.msra.mxu0 %v2105_v63 }
 0x2dd   : > { %1846 = vmatprep.subr.bf16.mxu0 %v2398_v35 }
 0x2de   : > { %1916 = vmatpush3.bf16.msra.mxu1 %v1915_v25 }
 0x2df   : > { %1917 = vmatprep.subr.bf16.mxu1 %v2400_v7 }
 0x2e0   : > { %1847 = vmatpush3.bf16.msra.mxu0 %v2106_v0 }
 0x2e2   : > { %1919 = vmatpush3.bf16.msra.mxu1 %v1918_v28 }
 0x2e3   : > { %1849 = vmatmul.mubr.bf16.vlgmr.msra.gmra.mrb[4].mxu0 %v826_v3  ;;  %1887 = vmatprep.subr.mxu1 %v2398_v35  ;;  %v1262_v3 = vld [vmem:[%s3092_s1] sm:$0xff] }
 0x396   : > { %v942_v29 = vpop.f32.mrb[0].mxu0 }
 0x397   : > { %v1031_v30 = vpop.f32.mrb[0].mxu1  ;;  %v1810_v31 = vpop.f32.mrb[1].mxu0 }
 0x398   : > { %v1032_v32 = vadd.f32 %v1031_v30, %v942_v29  ;;  %v1830_v33 = vpop.f32.mrb[1].mxu1  ;;  %v945_v34 = vpop.f32.mrb[2].mxu0 }
 0x399   : > { %v1034_v36 = vpop.f32.mrb[2].mxu1  ;;  %v1811_v37 = vpop.f32.mrb[3].mxu0 }
 0x39a   : > { %v1035_v38 = vadd.f32 %v1034_v36, %v945_v34  ;;  %v1831_v39 = vpop.f32.mrb[3].mxu1 }
 0x3b6   : > { %v1137_v40 = vpop.f32.mrb[4].mxu0 }
 0x3b7   : > { %v1144_v42 = vadd.f32 %v1137_v40, %v1032_v32  ;;  %v1850_v43 = vpop.f32.mrb[5].mxu0 }
 0x3b8   : > { %v1140_v44 = vpop.f32.mrb[6].mxu0 }
 0x3b9   : > { %v1153_v45 = vadd.f32 %v1665_v41, %v1144_v42  ;;  %v1145_v46 = vadd.f32 %v1140_v44, %v1035_v38  ;;  %v1851_v47 = vpop.f32.mrb[7].mxu0 }
 0x3bb   : > { %v1154_v48 = vadd.f32 %v1665_v41, %v1145_v46  ;;  %v1162_v49 = vmul.f32 %v1153_v45, %v1153_v45 }
 0x3bd   : > { %v1155_v50 = vadd.f32 %v1154_v48, %v1153_v45  ;;  %v1163_v51 = vmul.f32 %v1154_v48, %v1154_v48 }
 0x3bf   : > { %v1156_v52 = vrot.slane %v1155_v50, 4  ;;  %v1164_v53 = vadd.f32 %v1163_v51, %v1162_v49 }
 0x3c1   : > { %v1157_v54 = vadd.f32 %v1156_v52, %v1155_v50  ;;  %v1165_v55 = vrot.slane %v1164_v53, 4 }
 0x3c3   : > { %v1158_v57 = vrot.slane %v1157_v54, 2  ;;  %v1166_v58 = vadd.f32 %v1165_v55, %v1164_v53 }
 0x3c5   : > { %v1159_v59 = vadd.f32 %v1158_v57, %v1157_v54  ;;  %v1167_v60 = vrot.slane %v1166_v58, 2 }
 0x3c7   : > { %v1160_v62 = vrot.slane %v1159_v59, 1  ;;  %v1168_v63 = vadd.f32 %v1167_v60, %v1166_v58 }
 0x3c9   : > { %v1169_v0 = vrot.slane %v1168_v63, 1  ;;  %v1161_v1 = vadd.f32 %v1160_v62, %v1159_v59 }
 0x3cb   : > { %v1170_v2 = vadd.f32 %v1169_v0, %v1168_v63 }
 0x3cd   : > { %v1174_v4 = vsel %vm1173_vm3, %v1161_v1, %v1170_v2 }
 0x3ce   : > { %1885 = vmatmul.mubr.f32.vlgmr.msra.gmra.mrb[4].mxu1 %v1174_v4 }
 0x3cf   : > { %1888 = vmatpush3.msra.mxu1 %v1262_v3  ;;  %1889 = vmatprep.mubr.msk.f32.mxu1 %vm2399_vm2, %v2398_v35 }
 0x4a1   : > { %v1257_v5 = vpop.f32.mrb[4].mxu1 }
 0x4a2   : > { %v1261_v6 = vmul.f32 0.00390625, %v1257_v5  ;;  %v1886_v7 = vpop.f32.mrb[5].mxu1 }
 0x4a4   : > { %1890 = vmatmul.mubr.msk.f32.vlgmr.msra.gmra.mrb[6].mxu1 %vm1263_vm4, %v1261_v6 }
 0x577   : > { %v1333_v8 = vpop.f32.mrb[6].mxu1 }
 0x578   : > { %v1337_v9 = vmul.f32 %v1333_v8, %v1333_v8  ;;  %v1891_v10 = vpop.f32.mrb[7].mxu1  ;;  %v1347_v35 = vrot.slane %v1333_v8, %v1346_v14 }
 0x57a   : > { %v1339_v11 = vrot.slane %v1337_v9, 7  ;;  %v1348_v19 = vsub.f32 %v1153_v45, %v1347_v35  ;;  %v1349_v20 = vsub.f32 %v1154_v48, %v1347_v35 }
 0x57c   : > { %v1341_v12 = vsub.f32 %v1333_v8, %v1339_v11 }
 0x57e   : > { %v1342_v13 = vadd.f32 1e-05, %v1341_v12 }
 0x580   : > { %2107 = vrsqrt.f32 %v1342_v13 }
 0x58a   : > { %v2108_v17 = vpop.eup %2107 }
 0x58b   : > { %v1357_v18 = vmul.f32 %v2108_v17, %v1667_v15 }
 0x58d   : > { %v1361_v21 = vrot.slane %v1357_v18, %v1360_v16  ;;  %1378 = sbr.rel (%p1669_p6) target bundleno = 1430 (0x596), region = 88 }
 0x58f   : > { %v1362_v23 = vmul.f32 %v1361_v21, %v1348_v19  ;;  %v1363_v24 = vmul.f32 %v1361_v21, %v1349_v20 }
 0x591   : > { %v1371_v25 = vadd.f32 %v1668_v22, %v1362_v23  ;;  %v1372_v26 = vadd.f32 %v1668_v22, %v1363_v24 }
 0x593   : > { %v1373_v27 = vmax.f32 %v1371_v25, 0.0  ;;  %v1374_v28 = vmax.f32 %v1372_v26, 0.0 }
 0x595   : > { %1379 = vst [vmem:[#allocation2 + $0x1] sm:$0xff] %v1373_v27  ;;  %1380 = vst [vmem:[#allocation2 + $0x9] sm:$0xff] %v1374_v28 }
 0x596 PF: > { %s3095_s9 = sld [smem:[#allocation18_spill]] }
 0x59c   : > { %p1670_p7 = scmp.ne.s32.totalorder %s3095_s9, 5 }
 0x59d   : > { %1385 = vst [vmem:[%s2760_s22] sm:$0xff] (!%p1670_p7), %v1373_v27  ;;  %1386 = vst [vmem:[%s2760_s22 + $0x8] sm:$0xff] (!%p1670_p7), %v1374_v28 }
 0x59e   : > { %1384 = sbr.rel (%p1670_p7) target bundleno = 1445 (0x5a5), region = 92 }
 0x5a5 PF: > { %s3096_s27 = sld [smem:[#allocation21_spill]]  ;;  %s1676_s11 = sshll.u32 %s2373_s20, 8 }
 0x5a6   : > { %s3097_s28 = sld [smem:[#allocation34_spill]]  ;;  %s1401_s8 = sshll.u32 %s2760_s22, 4  ;;  %s2942_s8 = int_to_ptr.vmem [resolvable:$true] %s1401_s8 }
 0x5a7   : > { %s2946_s16 = scalar_lea.sflag [#allocation5], %s498_s24  ;;  %s2255_s6 = scalar_lea.vmem %s2942_s8, 256 }
 0x5a8   : > { %p2256_p12 = scmp.ne.s32.totalorder %s2942_s8, %s2255_s6  ;;  %s2401_s20 = smov [#allocation11]  }
 0x5a9   : > { %s2259_s19 = sshll.u32 %s2401_s20, 4  ;;  %s2260_s19 = int_to_ptr.vmem [resolvable:$false] %s2259_s19 }
 0x5aa   : > { %s2261_s10 = scalar_lea.vmem %s2260_s19, 512  ;;  %p2262_p10 = scmp.lt.s32.totalorder %s2942_s8, %s2260_s19 }
 0x5ab   : > { %p3098_p3 = scmp.ne.s32.totalorder %s3096_s27, 0  ;;  %p2263_p11 = scmp.lt.s32.totalorder %s2261_s10, %s2255_s6 }
 0x5ac   : > { %s2939_s4 = scalar_lea.hbm %s3097_s28, %s1676_s11 }
 0x5ad   : > { %p2257_p8 = pnand %p2256_p12, %p3098_p3  ;;  %p2264_p4 = por %p2263_p11, %p2262_p10 }
 0x5af   : > { %p2258_p0 = pneg %p2257_p8 }
 0x5b1   : > { %p2265_p1 = pnand %p2264_p4, %p2258_p0 }
 0x5b3   : > { %2268 = shalt.err (!%p2265_p1)
}
 0x5b4   : > { %s2269_s24 = scalar_lea.hbm %s2939_s4, 256  ;;  %s2273_s23 = scalar_lea.hbm %s3097_s28, 512 }
 0x5b5   : > { %p2270_p5 = scmp.ne.s32.totalorder %s2939_s4, %s2269_s24  ;;  %p2274_p2 = scmp.lt.u32.totalorder %s2939_s4, %s3097_s28 }
 0x5b6   : > { %p2275_p6 = scmp.lt.u32.totalorder %s2273_s23, %s2269_s24  ;;  %p2277_p12 = scmp.lt.u32.totalorder %s2269_s24, %s2939_s4 }
 0x5b7   : > { %p2271_p13 = pnand %p2270_p5, %p3098_p3 }
 0x5b8   : > { %p2276_p7 = por %p2275_p6, %p2274_p2 }
 0x5b9   : > { %p2272_p9 = pneg %p2271_p13 }
 0x5ba   : > { %p2278_p8 = por %p2277_p12, %p2276_p7 }
 0x5bc   : > { %p2279_p0 = pnand %p2278_p8, %p2272_p9 }
 0x5be   : > { %2282 = shalt.err (!%p2279_p0)
}
 0x5bf   : > { %s2402_s25 = smov 128   ;;  %s2403_s30 = smov 8  }
 0x5c0   : > { %1937 = dma.vmem_to_hbm [thread:$0]  (%p3098_p3), %s2942_s8, 256, %s2939_s4, %s2946_s16, %s2402_s25, %s2402_s25, %s2403_s30  }
 0x5c1 PF: > { %s3099_s26 = sld [smem:[#allocation20_spill]]  ;;  %s3100_s9 = sld [smem:[#allocation16_spill]] }
 0x5c2   : > { %s3101_s11 = sld [smem:[#allocation22_spill]] }
 0x5c7   : > { %p1965_p10 = scmp.ge.s32.totalorder %s3099_s26, 2  ;;  %s1416_s13 = sand.u32 1, %s3100_s9  }
 0x5c8   : > { %p3102_p11 = scmp.ne.s32.totalorder %s3101_s11, 0  ;;  %s1417_s2 = scalar_lea.sflag [#allocation5], %s1416_s13 }
 0x5ca   : > { %p1957_p4 = pnand %p1965_p10, %p3102_p11 }
 0x5cc   : > { %2340 = dma.done.wait (!%p1957_p4), %s1417_s2, 256  }
 0x5cd   : > { %2342 = vsyncadd (!%p1957_p4), %s1417_s2, 4294967040  ;;  %s25_s23 = sadd.s32 1, %s3099_s26   ;;  %s3103_s6 = sld [smem:[#allocation26_spill]] }
 0x5ce   : > { %p22_p1 = scmp.ge.s32.totalorder %s25_s23, 14   ;;  %s3104_s27 = sld [smem:[#allocation17_spill]] }
 0x5cf   : > { %s3105_s18 = sld [smem:[#allocation25_spill]]  ;;  %s3106_s20 = sld [smem:[#allocation19_spill]] }
 0x5d0   : > { %s3107_s4 = sld [smem:[#allocation23_spill]]  ;;  %s3108_s22 = sld [smem:[#allocation24_spill]] }
 0x5d1   : > { %s3109_s13 = smov %s2349_s14  ;;  %s3110_s14 = smov %s2353_s15 }
 0x5d2   : > { %s3112_s16 = smov %s2361_s17  ;;  %s3114_s19 = smov %s2377_s21 }
 0x5d3   : > { %s3111_s15 = smov %s3103_s6  ;;  %24 = sbr.rel (!%p22_p1) target bundleno = 18 (0x12), region = 155 }
 0x5d4   : > { %s3113_s17 = smov %s3104_s27 }
 0x5d6   : > { %s3115_s21 = smov %s3107_s4 }
 0x5da   :  { %1422 = vsyncpa [#allocation4], 1 }
 0x5db   :  { %1424 = vsyncpa [#allocation4 + $0x1], 1 }
 0x5dc   :  { %1425 = vsyncpa [#allocation7], 1 }
 0x5dd   :  { %1426 = vsyncpa [#allocation5], 1 }
 0x5de   :  { %1428 = vsyncpa [#allocation5 + $0x1], 1 }

</bundles_post_ra>
